<compile_context>
chip_gen: v7x
topology: tpu7x:2x2x1
jax: 0.10.0
libtpu: 0.0.40
codegen_flags: <defaults>
</compile_context>

<pallas_src>
import functools

import jax
import jax.numpy as jnp
from jax.experimental import pallas as pl
from jax.experimental.pallas import tpu as pltpu

_LANES = 128


def _round_up(x, m):
    return ((x + m - 1) // m) * m


# --------------------------------------------------------------------------
# Kernel
# --------------------------------------------------------------------------
def conv_bna_kernel(x_ref, w_ref, b_ref, o_ref, pad_ref, *, H, W, relu):
    """Fused 3x3 conv + folded-BN bias + activation for one NHWC image.

    x_ref   : (1, H, W, Cin_p)      lane-padded input tile
    w_ref   : (9, Cin_p, Cout_p)    BN-scale-folded, lane-padded weights
    b_ref   : (1, Cout_p)           folded BN bias (lane padded)
    o_ref   : (1, H, W, Cout_p)     lane-dense output tile
    pad_ref : (H+2, W+2, Cin_p) f32 VMEM scratch holding the zero halo
    """
    cin_p = x_ref.shape[-1]
    cout_p = o_ref.shape[-1]

    # Zero halo built in VMEM: no wrapper-side spatial jnp.pad / extra HBM pass.
    pad_ref[...] = jnp.zeros_like(pad_ref)
    pad_ref[1:H + 1, 1:W + 1, :] = x_ref[0].astype(pad_ref.dtype)

    # 3x3 conv as nine accumulating full-depth MXU matmuls.  This is the
    # (H*W, 9*Cin_p) x (9*Cin_p, Cout_p) im2col matmul split along K (same
    # MACs, full contraction depth per pass, no duplicated im2col buffer).
    acc = jnp.zeros((H * W, cout_p), jnp.float32)
    for k in range(9):                              # static -> fully unrolled
        dy, dx = k // 3, k % 3
        patch = pad_ref[dy:dy + H, dx:dx + W, :].reshape(H * W, cin_p)
        acc += jnp.dot(patch.astype(w_ref.dtype), w_ref[k],
                       preferred_element_type=jnp.float32)

    # Epilogue in f32: folded-BN bias + activation, then one lane-dense store.
    out = acc + b_ref[0]
    if relu:
        out = jnp.maximum(out, 0.0)
    o_ref[...] = out.reshape(1, H, W, cout_p).astype(o_ref.dtype)


# --------------------------------------------------------------------------
# Wrapper
# --------------------------------------------------------------------------
def conv_bna_forward(x_nchw, weight, gamma, beta, running_mean, running_var,
                     *, eps=1e-5, relu=True, compute_dtype=jnp.float32):
    """ConvBNA.forward (eval mode): ReLU(BN(conv3x3_s1_p1(x))). NCHW in/out."""
    N, Cin, H, W = x_nchw.shape
    Cout, cin_w, kh, kw = weight.shape
    assert (cin_w, kh, kw) == (Cin, 3, 3)

    # ---- fold eval-mode BatchNorm into the conv -----------------------------
    #   BN(conv(x, w)) = conv(x, w * s) + (beta - mean * s),  s = g/sqrt(var+eps)
    scale = (gamma / jnp.sqrt(running_var + eps)).astype(jnp.float32)
    bias = (beta - running_mean * scale).astype(jnp.float32)

    # PyTorch (Cout, Cin, 3, 3) -> (3, 3, Cin, Cout) -> (9, Cin, Cout), scaled.
    w9 = jnp.transpose(weight.astype(jnp.float32), (2, 3, 1, 0))
    w9 = w9.reshape(9, Cin, Cout) * scale[None, None, :]

    # ---- lane-pad channels to 128 so compute and stores are lane-dense ------
    cin_p = _round_up(Cin, _LANES)
    cout_p = _round_up(Cout, _LANES)
    w_p = jnp.zeros((9, cin_p, cout_p), compute_dtype)
    w_p = w_p.at[:, :Cin, :Cout].set(w9.astype(compute_dtype))
    b_p = jnp.zeros((1, cout_p), jnp.float32).at[:, :Cout].set(bias)

    # NCHW -> NHWC (unavoidable relayout); channel zero-pad rides on the same
    # pass.  The *spatial* halo is handled inside the kernel.
    x_nhwc = jnp.transpose(x_nchw, (0, 2, 3, 1))
    if cin_p != Cin:
        x_nhwc = jnp.pad(x_nhwc, ((0, 0), (0, 0), (0, 0), (0, cin_p - Cin)))

    kernel = functools.partial(conv_bna_kernel, H=H, W=W, relu=relu)

    y_p = pl.pallas_call(
        kernel,
        out_shape=jax.ShapeDtypeStruct((N, H, W, cout_p), x_nchw.dtype),
        grid_spec=pltpu.PrefetchScalarGridSpec(
            num_scalar_prefetch=0,
            grid=(N,),
            in_specs=[
                pl.BlockSpec((1, H, W, cin_p), lambda n: (n, 0, 0, 0)),
                # constant index maps -> weights / bias stay VMEM-resident
                pl.BlockSpec((9, cin_p, cout_p), lambda n: (0, 0, 0)),
                pl.BlockSpec((1, cout_p), lambda n: (0, 0)),
            ],
            out_specs=pl.BlockSpec((1, H, W, cout_p), lambda n: (n, 0, 0, 0)),
            scratch_shapes=[pltpu.VMEM((H + 2, W + 2, cin_p), jnp.float32)],
        ),
        compiler_params=pltpu.CompilerParams(
            dimension_semantics=("parallel",)),
    )(x_nhwc, w_p, b_p)

    # Drop the lane padding, back to NCHW.
    return jnp.transpose(y_p[..., :Cout], (0, 3, 1, 2))


# --------------------------------------------------------------------------
# Pure-JAX reference (uses the raw, unfolded parameters)
# --------------------------------------------------------------------------
def conv_bna_reference(x_nchw, weight, gamma, beta, running_mean, running_var,
                       eps=1e-5, relu=True):
    x = jnp.transpose(x_nchw, (0, 2, 3, 1))                  # NCHW -> NHWC
    w_hwio = jnp.transpose(weight, (2, 3, 1, 0))
    y = jax.lax.conv_general_dilated(
        x, w_hwio, window_strides=(1, 1), padding="SAME",
        dimension_numbers=("NHWC", "HWIO", "NHWC"),
        precision=jax.lax.Precision.HIGHEST)
    scale = gamma / jnp.sqrt(running_var + eps)
    bias = beta - running_mean * scale
    y = y * scale + bias
    if relu:
        y = jnp.maximum(y, 0.0)
    return jnp.transpose(y, (0, 3, 1, 2))                    # NHWC -> NCHW


# --------------------------------------------------------------------------
if __name__ == "__main__":
    key = jax.random.PRNGKey(0)
    kx, kw, kg, kb, km, kv = jax.random.split(key, 6)

    N, Cin, H, W = 2, 4, 16, 16
    Cout = 8                                   # exercise idim != odim

    x = jax.random.normal(kx, (N, Cin, H, W), jnp.float32)
    weight = 0.1 * jax.random.normal(kw, (Cout, Cin, 3, 3), jnp.float32)
    gamma = 1.0 + 0.1 * jax.random.normal(kg, (Cout,), jnp.float32)
    beta = 0.1 * jax.random.normal(kb, (Cout,), jnp.float32)
    rmean = 0.05 * jax.random.normal(km, (Cout,), jnp.float32)
    rvar = jnp.abs(1.0 + 0.1 * jax.random.normal(kv, (Cout,), jnp.float32))

    ref = conv_bna_reference(x, weight, gamma, beta, rmean, rvar)

    # f32 MXU path — tight correctness check.
    out = conv_bna_forward(x, weight, gamma, beta, rmean, rvar,
                           compute_dtype=jnp.float32)
    out = jax.block_until_ready(out)
    assert out.shape == (N, Cout, H, W)
    assert jnp.allclose(out, ref, atol=1e-4, rtol=1e-4)

    # bf16 MXU path (f32 accumulation / epilogue) — recommended on v6e/v7x.
    out_bf16 = jax.block_until_ready(
        conv_bna_forward(x, weight, gamma, beta, rmean, rvar,
                         compute_dtype=jnp.bfloat16))
    assert jnp.allclose(out_bf16, ref, atol=5e-2, rtol=5e-2)

    print("KERNEL_OK")
</pallas_src>

<mosaic_0001>
module attributes {stable_mosaic.version = 11 : i64} {
  func.func @conv_bna_kernel(%arg0: i32, %arg1: memref<1x16x16x128xf32, #tpu.memory_space<vmem>>, %arg2: memref<9x128x128xf32, #tpu.memory_space<vmem>>, %arg3: memref<1x128xf32, #tpu.memory_space<vmem>>, %arg4: memref<1x16x16x128xf32, #tpu.memory_space<vmem>>, %arg5: memref<18x18x128xf32, #tpu.memory_space<vmem>>) attributes {dimension_semantics = [#tpu.dimension_semantics<parallel>], iteration_bounds = array<i64: 2>, scalar_prefetch = 0 : i64, scratch_operands = 1 : i64, tpu.core_type = #tpu.core_type<tc>, window_params = [{transform_indices = @transform_0, window_bounds = array<i64: 1, 16, 16, 128>}, {pipeline_mode = #tpu.pipeline_mode<synchronous>, transform_indices = @transform_1, window_bounds = array<i64: 9, 128, 128>}, {pipeline_mode = #tpu.pipeline_mode<synchronous>, transform_indices = @transform_2, window_bounds = array<i64: 1, 128>}, {transform_indices = @transform_3, window_bounds = array<i64: 1, 16, 16, 128>}]} {
    %cst = arith.constant 0.000000e+00 : f32
    %0 = vector.broadcast %cst : f32 to vector<18x18x128xf32>
    %c0 = arith.constant 0 : index
    %c0_0 = arith.constant 0 : index
    %c0_1 = arith.constant 0 : index
    %1 = vector.load %arg5[%c0, %c0_0, %c0_1] : memref<18x18x128xf32, #tpu.memory_space<vmem>>, vector<18x18x128xf32>
    tpu.vector_store %arg5[%c0, %c0_0, %c0_1], %0 {strides = array<i32>} : memref<18x18x128xf32, #tpu.memory_space<vmem>>, vector<18x18x128xf32>,
    %c0_2 = arith.constant 0 : index
    %c0_3 = arith.constant 0 : index
    %c0_4 = arith.constant 0 : index
    %c0_5 = arith.constant 0 : index
    %2 = vector.load %arg1[%c0_2, %c0_3, %c0_4, %c0_5] : memref<1x16x16x128xf32, #tpu.memory_space<vmem>>, vector<1x16x16x128xf32>
    %3 = vector.shape_cast %2 : vector<1x16x16x128xf32> to vector<16x16x128xf32>
    %c1 = arith.constant 1 : index
    %c1_6 = arith.constant 1 : index
    %c0_7 = arith.constant 0 : index
    %4 = vector.load %arg5[%c1, %c1_6, %c0_7] : memref<18x18x128xf32, #tpu.memory_space<vmem>>, vector<16x16x128xf32>
    tpu.vector_store %arg5[%c1, %c1_6, %c0_7], %3 {strides = array<i32>} : memref<18x18x128xf32, #tpu.memory_space<vmem>>, vector<16x16x128xf32>,
    %cst_8 = arith.constant 0.000000e+00 : f32
    %5 = vector.broadcast %cst_8 : f32 to vector<256x128xf32>
    %c0_9 = arith.constant 0 : index
    %c0_10 = arith.constant 0 : index
    %c0_11 = arith.constant 0 : index
    %6 = vector.load %arg5[%c0_9, %c0_10, %c0_11] : memref<18x18x128xf32, #tpu.memory_space<vmem>>, vector<16x16x128xf32>
    %7 = vector.shape_cast %6 : vector<16x16x128xf32> to vector<256x128xf32>
    %c0_12 = arith.constant 0 : index
    %c0_13 = arith.constant 0 : index
    %c0_14 = arith.constant 0 : index
    %8 = vector.load %arg2[%c0_12, %c0_13, %c0_14] : memref<9x128x128xf32, #tpu.memory_space<vmem>>, vector<1x128x128xf32>
    %9 = vector.shape_cast %8 : vector<1x128x128xf32> to vector<128x128xf32>
    %cst_15 = arith.constant dense<0.000000e+00> : vector<256x128xf32>
    %10 = tpu.matmul %7, %9, %cst_15 {dimension_numbers = #tpu.dot_dimension_numbers<[1], [0], [0], [1], [0, 0, 1, 1], [], []>} : vector<256x128xf32>, vector<128x128xf32>, vector<256x128xf32> -> vector<256x128xf32>
    %11 = arith.addf %5, %10 : vector<256x128xf32>
    %c0_16 = arith.constant 0 : index
    %c1_17 = arith.constant 1 : index
    %c0_18 = arith.constant 0 : index
    %12 = vector.load %arg5[%c0_16, %c1_17, %c0_18] : memref<18x18x128xf32, #tpu.memory_space<vmem>>, vector<16x16x128xf32>
    %13 = vector.shape_cast %12 : vector<16x16x128xf32> to vector<256x128xf32>
    %c1_19 = arith.constant 1 : index
    %c0_20 = arith.constant 0 : index
    %c0_21 = arith.constant 0 : index
    %14 = vector.load %arg2[%c1_19, %c0_20, %c0_21] : memref<9x128x128xf32, #tpu.memory_space<vmem>>, vector<1x128x128xf32>
    %15 = vector.shape_cast %14 : vector<1x128x128xf32> to vector<128x128xf32>
    %cst_22 = arith.constant dense<0.000000e+00> : vector<256x128xf32>
    %16 = tpu.matmul %13, %15, %cst_22 {dimension_numbers = #tpu.dot_dimension_numbers<[1], [0], [0], [1], [0, 0, 1, 1], [], []>} : vector<256x128xf32>, vector<128x128xf32>, vector<256x128xf32> -> vector<256x128xf32>
    %17 = arith.addf %11, %16 : vector<256x128xf32>
    %c0_23 = arith.constant 0 : index
    %c2 = arith.constant 2 : index
    %c0_24 = arith.constant 0 : index
    %18 = vector.load %arg5[%c0_23, %c2, %c0_24] : memref<18x18x128xf32, #tpu.memory_space<vmem>>, vector<16x16x128xf32>
    %19 = vector.shape_cast %18 : vector<16x16x128xf32> to vector<256x128xf32>
    %c2_25 = arith.constant 2 : index
    %c0_26 = arith.constant 0 : index
    %c0_27 = arith.constant 0 : index
    %20 = vector.load %arg2[%c2_25, %c0_26, %c0_27] : memref<9x128x128xf32, #tpu.memory_space<vmem>>, vector<1x128x128xf32>
    %21 = vector.shape_cast %20 : vector<1x128x128xf32> to vector<128x128xf32>
    %cst_28 = arith.constant dense<0.000000e+00> : vector<256x128xf32>
    %22 = tpu.matmul %19, %21, %cst_28 {dimension_numbers = #tpu.dot_dimension_numbers<[1], [0], [0], [1], [0, 0, 1, 1], [], []>} : vector<256x128xf32>, vector<128x128xf32>, vector<256x128xf32> -> vector<256x128xf32>
    %23 = arith.addf %17, %22 : vector<256x128xf32>
    %c1_29 = arith.constant 1 : index
    %c0_30 = arith.constant 0 : index
    %c0_31 = arith.constant 0 : index
    %24 = vector.load %arg5[%c1_29, %c0_30, %c0_31] : memref<18x18x128xf32, #tpu.memory_space<vmem>>, vector<16x16x128xf32>
    %25 = vector.shape_cast %24 : vector<16x16x128xf32> to vector<256x128xf32>
    %c3 = arith.constant 3 : index
    %c0_32 = arith.constant 0 : index
    %c0_33 = arith.constant 0 : index
    %26 = vector.load %arg2[%c3, %c0_32, %c0_33] : memref<9x128x128xf32, #tpu.memory_space<vmem>>, vector<1x128x128xf32>
    %27 = vector.shape_cast %26 : vector<1x128x128xf32> to vector<128x128xf32>
    %cst_34 = arith.constant dense<0.000000e+00> : vector<256x128xf32>
    %28 = tpu.matmul %25, %27, %cst_34 {dimension_numbers = #tpu.dot_dimension_numbers<[1], [0], [0], [1], [0, 0, 1, 1], [], []>} : vector<256x128xf32>, vector<128x128xf32>, vector<256x128xf32> -> vector<256x128xf32>
    %29 = arith.addf %23, %28 : vector<256x128xf32>
    %c1_35 = arith.constant 1 : index
    %c1_36 = arith.constant 1 : index
    %c0_37 = arith.constant 0 : index
    %30 = vector.load %arg5[%c1_35, %c1_36, %c0_37] : memref<18x18x128xf32, #tpu.memory_space<vmem>>, vector<16x16x128xf32>
    %31 = vector.shape_cast %30 : vector<16x16x128xf32> to vector<256x128xf32>
    %c4 = arith.constant 4 : index
    %c0_38 = arith.constant 0 : index
    %c0_39 = arith.constant 0 : index
    %32 = vector.load %arg2[%c4, %c0_38, %c0_39] : memref<9x128x128xf32, #tpu.memory_space<vmem>>, vector<1x128x128xf32>
    %33 = vector.shape_cast %32 : vector<1x128x128xf32> to vector<128x128xf32>
    %cst_40 = arith.constant dense<0.000000e+00> : vector<256x128xf32>
    %34 = tpu.matmul %31, %33, %cst_40 {dimension_numbers = #tpu.dot_dimension_numbers<[1], [0], [0], [1], [0, 0, 1, 1], [], []>} : vector<256x128xf32>, vector<128x128xf32>, vector<256x128xf32> -> vector<256x128xf32>
    %35 = arith.addf %29, %34 : vector<256x128xf32>
    %c1_41 = arith.constant 1 : index
    %c2_42 = arith.constant 2 : index
    %c0_43 = arith.constant 0 : index
    %36 = vector.load %arg5[%c1_41, %c2_42, %c0_43] : memref<18x18x128xf32, #tpu.memory_space<vmem>>, vector<16x16x128xf32>
    %37 = vector.shape_cast %36 : vector<16x16x128xf32> to vector<256x128xf32>
    %c5 = arith.constant 5 : index
    %c0_44 = arith.constant 0 : index
    %c0_45 = arith.constant 0 : index
    %38 = vector.load %arg2[%c5, %c0_44, %c0_45] : memref<9x128x128xf32, #tpu.memory_space<vmem>>, vector<1x128x128xf32>
    %39 = vector.shape_cast %38 : vector<1x128x128xf32> to vector<128x128xf32>
    %cst_46 = arith.constant dense<0.000000e+00> : vector<256x128xf32>
    %40 = tpu.matmul %37, %39, %cst_46 {dimension_numbers = #tpu.dot_dimension_numbers<[1], [0], [0], [1], [0, 0, 1, 1], [], []>} : vector<256x128xf32>, vector<128x128xf32>, vector<256x128xf32> -> vector<256x128xf32>
    %41 = arith.addf %35, %40 : vector<256x128xf32>
    %c2_47 = arith.constant 2 : index
    %c0_48 = arith.constant 0 : index
    %c0_49 = arith.constant 0 : index
    %42 = vector.load %arg5[%c2_47, %c0_48, %c0_49] : memref<18x18x128xf32, #tpu.memory_space<vmem>>, vector<16x16x128xf32>
    %43 = vector.shape_cast %42 : vector<16x16x128xf32> to vector<256x128xf32>
    %c6 = arith.constant 6 : index
    %c0_50 = arith.constant 0 : index
    %c0_51 = arith.constant 0 : index
    %44 = vector.load %arg2[%c6, %c0_50, %c0_51] : memref<9x128x128xf32, #tpu.memory_space<vmem>>, vector<1x128x128xf32>
    %45 = vector.shape_cast %44 : vector<1x128x128xf32> to vector<128x128xf32>
    %cst_52 = arith.constant dense<0.000000e+00> : vector<256x128xf32>
    %46 = tpu.matmul %43, %45, %cst_52 {dimension_numbers = #tpu.dot_dimension_numbers<[1], [0], [0], [1], [0, 0, 1, 1], [], []>} : vector<256x128xf32>, vector<128x128xf32>, vector<256x128xf32> -> vector<256x128xf32>
    %47 = arith.addf %41, %46 : vector<256x128xf32>
    %c2_53 = arith.constant 2 : index
    %c1_54 = arith.constant 1 : index
    %c0_55 = arith.constant 0 : index
    %48 = vector.load %arg5[%c2_53, %c1_54, %c0_55] : memref<18x18x128xf32, #tpu.memory_space<vmem>>, vector<16x16x128xf32>
    %49 = vector.shape_cast %48 : vector<16x16x128xf32> to vector<256x128xf32>
    %c7 = arith.constant 7 : index
    %c0_56 = arith.constant 0 : index
    %c0_57 = arith.constant 0 : index
    %50 = vector.load %arg2[%c7, %c0_56, %c0_57] : memref<9x128x128xf32, #tpu.memory_space<vmem>>, vector<1x128x128xf32>
    %51 = vector.shape_cast %50 : vector<1x128x128xf32> to vector<128x128xf32>
    %cst_58 = arith.constant dense<0.000000e+00> : vector<256x128xf32>
    %52 = tpu.matmul %49, %51, %cst_58 {dimension_numbers = #tpu.dot_dimension_numbers<[1], [0], [0], [1], [0, 0, 1, 1], [], []>} : vector<256x128xf32>, vector<128x128xf32>, vector<256x128xf32> -> vector<256x128xf32>
    %53 = arith.addf %47, %52 : vector<256x128xf32>
    %c2_59 = arith.constant 2 : index
    %c2_60 = arith.constant 2 : index
    %c0_61 = arith.constant 0 : index
    %54 = vector.load %arg5[%c2_59, %c2_60, %c0_61] : memref<18x18x128xf32, #tpu.memory_space<vmem>>, vector<16x16x128xf32>
    %55 = vector.shape_cast %54 : vector<16x16x128xf32> to vector<256x128xf32>
    %c8 = arith.constant 8 : index
    %c0_62 = arith.constant 0 : index
    %c0_63 = arith.constant 0 : index
    %56 = vector.load %arg2[%c8, %c0_62, %c0_63] : memref<9x128x128xf32, #tpu.memory_space<vmem>>, vector<1x128x128xf32>
    %57 = vector.shape_cast %56 : vector<1x128x128xf32> to vector<128x128xf32>
    %cst_64 = arith.constant dense<0.000000e+00> : vector<256x128xf32>
    %58 = tpu.matmul %55, %57, %cst_64 {dimension_numbers = #tpu.dot_dimension_numbers<[1], [0], [0], [1], [0, 0, 1, 1], [], []>} : vector<256x128xf32>, vector<128x128xf32>, vector<256x128xf32> -> vector<256x128xf32>
    %59 = arith.addf %53, %58 : vector<256x128xf32>
    %c0_65 = arith.constant 0 : index
    %c0_66 = arith.constant 0 : index
    %60 = vector.load %arg3[%c0_65, %c0_66] : memref<1x128xf32, #tpu.memory_space<vmem>>, vector<1x128xf32>
    %61 = vector.shape_cast %60 : vector<1x128xf32> to vector<128xf32>
    %62 = vector.shape_cast %61 : vector<128xf32> to vector<1x128xf32>
    %63 = vector.broadcast %62 : vector<1x128xf32> to vector<256x128xf32>
    %64 = arith.addf %59, %63 : vector<256x128xf32>
    %cst_67 = arith.constant 0.000000e+00 : f32
    %65 = vector.broadcast %cst_67 : f32 to vector<256x128xf32>
    %66 = arith.maximumf %64, %65 : vector<256x128xf32>
    %67 = vector.shape_cast %66 : vector<256x128xf32> to vector<1x16x16x128xf32>
    %c0_68 = arith.constant 0 : index
    %c0_69 = arith.constant 0 : index
    %c0_70 = arith.constant 0 : index
    %c0_71 = arith.constant 0 : index
    %68 = vector.load %arg4[%c0_68, %c0_69, %c0_70, %c0_71] : memref<1x16x16x128xf32, #tpu.memory_space<vmem>>, vector<1x16x16x128xf32>
    tpu.vector_store %arg4[%c0_68, %c0_69, %c0_70, %c0_71], %67 {strides = array<i32>} : memref<1x16x16x128xf32, #tpu.memory_space<vmem>>, vector<1x16x16x128xf32>,
    return
  }
  func.func @transform_0(%arg0: i32) -> (i32, i32, i32, i32) {
    %c0_i32 = arith.constant 0 : i32
    %c0_i32_0 = arith.constant 0 : i32
    %c0_i32_1 = arith.constant 0 : i32
    %c0_i32_2 = arith.constant 0 : i32
    return %arg0, %c0_i32, %c0_i32_0, %c0_i32_1 : i32, i32, i32, i32
  }
  func.func @transform_1(%arg0: i32) -> (i32, i32, i32) {
    %c0_i32 = arith.constant 0 : i32
    %c0_i32_0 = arith.constant 0 : i32
    %c0_i32_1 = arith.constant 0 : i32
    %c0_i32_2 = arith.constant 0 : i32
    return %c0_i32, %c0_i32_0, %c0_i32_1 : i32, i32, i32
  }
  func.func @transform_2(%arg0: i32) -> (i32, i32) {
    %c0_i32 = arith.constant 0 : i32
    %c0_i32_0 = arith.constant 0 : i32
    %c0_i32_1 = arith.constant 0 : i32
    return %c0_i32, %c0_i32_0 : i32, i32
  }
  func.func @transform_3(%arg0: i32) -> (i32, i32, i32, i32) {
    %c0_i32 = arith.constant 0 : i32
    %c0_i32_0 = arith.constant 0 : i32
    %c0_i32_1 = arith.constant 0 : i32
    %c0_i32_2 = arith.constant 0 : i32
    return %arg0, %c0_i32, %c0_i32_0, %c0_i32_1 : i32, i32, i32, i32
  }
}

</mosaic_0001>

<bundles_post_ra>
// kernel: tpu_custom_call.1
= control target key start
LH: loop header
LB: loop body
LE: loop exit
PB: predicated region body
PF: predicated region fallthrough
CT: control target
= control target key end

     0   :  { %8 = vsyncpa [#allocation4], 0  ;;  %s6066_s0 = inlined_call_operand.hbm [shape: f32[2,16,16,128], index: 0, kind: input, shape index: {}]   ;;  %s6067_s1 = inlined_call_operand.hbm [shape: f32[9,128,128], index: 1, kind: input, shape index: {}]   ;;  %s6068_s2 = inlined_call_operand.vmem [shape: f32[1,128], index: 2, kind: input, shape index: {}]   ;;  %s6069_s3 = inlined_call_operand.hbm [shape: f32[2,16,16,128], index: 3, kind: output, shape index: {}]  }
   0x1   :  { %10 = vsyncpa [#allocation4 + $0x1], 0 }
   0x2   :  { %11 = vsyncpa [#allocation7], 0 }
   0x3   :  { %12 = vsyncpa [#allocation5], 0 }
   0x4   :  { %14 = vsyncpa [#allocation5 + $0x1], 0  ;;  %s5173_s12 = smov 0   ;;  %s5175_s13 = smov 0  }
   0x5   :  { %s5177_s14 = smov 0   ;;  %s5179_s15 = smov 0  }
   0x6 LB: > { %s5194_s16 = sadd.s32 4294967295, %s5143_s15   ;;  %s3213_s17 = sadd.s32 4294967294, %s5143_s15   ;;  %s5143_s15 = sphi %s5179_s15, %s6148_s15   ;;  %s5139_s14 = sphi %s5177_s14, %s6147_s14   ;;  %s5135_s13 = sphi %s5175_s13, %s6146_s13   ;;  %s5131_s12 = sphi %s5173_s12, %s6145_s12  }
   0x7   : > { %p40_p0 = scmp.ne.s32.totalorder %s5135_s13, %s5131_s12  ;;  %p6070_p1 = scmp.eq.s32.totalorder %s5194_s16, 0 }
   0x8   : > { %p112_p3 = scmp.eq.s32.totalorder %s3213_s17, 1  ;;  %p3214_p5 = scmp.ge.s32.totalorder %s5143_s15, 1 }
   0x9   : > { %p5203_p4 = por %p6070_p1, %p40_p0  ;;  %p119_p7 = scmp.lt.s32.totalorder %s5143_s15, 3 }
   0xa   : > { %p5208_p6 = por %p112_p3, %p40_p0  ;;  %s5145_s21 = smov [#allocation6]  }
   0xb   : > { %s6096_s18 = scalar_select %p5203_p4, 1, 0 }
   0xc   : > { %s6097_s19 = scalar_select %p5208_p6, 1, 0 }
   0xd   : > { %p5213_p8 = pnand %p3214_p5, %p119_p7  ;;  %s131_s22 = sshll.u32 %s5145_s21, 4  ;;  %s5217_s22 = int_to_ptr.vmem [resolvable:$true] %s131_s22 }
   0xe   : > { %s5229_s24 = sadd.s32 1, %s5143_s15   ;;  %s27_s25 = sadd.s32 1, %s5139_s14 }
   0xf   : > { %s6098_s20 = scalar_select %p5213_p8, 1, 0 }
  0x10   : > { %p4952_p9 = pneg %p5213_p8  ;;  %s24_s26 = ssub.s32 %s5143_s15, %s5229_s24 }
  0x11   : > { %s5015_s29 = scalar_lea.hbm %s6067_s1, 18432 }
  0x12   : > { %p5224_p11 = pnand %p4952_p9, %p6070_p1  ;;  %p5016_p12 = scmp.ne.s32.totalorder %s6067_s1, %s5015_s29 }
  0x13   : > { %p5022_p5 = scmp.lt.u32.totalorder %s5015_s29, %s6067_s1 }
  0x14   : > { %p5017_p13 = pneg %p5224_p11 }
  0x16   : > { %p5018_p0 = pnand %p5017_p13, %p5016_p12 }
  0x18   : > { %p5019_p3 = pneg %p5018_p0 }
  0x1a   : > { %p5024_p7 = pnand %p5022_p5, %p5019_p3 }
  0x1c   : > { %5027 = shalt.err (!%p5024_p7)
}
  0x1d   : > { %s5028_s7 = scalar_lea.vmem %s5217_s22, 18432  ;;  %p5036_p2 = scmp.lt.s32.totalorder %s5217_s22, %s5217_s22 }
  0x1e   : > { %p5029_p9 = scmp.ne.s32.totalorder %s5217_s22, %s5028_s7  ;;  %p5037_p6 = scmp.lt.s32.totalorder %s5028_s7, %s5028_s7 }
  0x20   : > { %p5031_p10 = pnand %p5029_p9, %p5017_p13  ;;  %p5038_p4 = por %p5037_p6, %p5036_p2 }
  0x22   : > { %p5032_p1 = pneg %p5031_p10 }
  0x24   : > { %p5039_p8 = pnand %p5038_p4, %p5032_p1 }
  0x26   : > { %5042 = shalt.err (!%p5039_p8)
}
  0x27   : > { %s5146_s8 = smov 128   ;;  %s5147_s9 = smov 8  }
  0x28   : > { %4955 = dma.hbm_to_vmem [thread:$0]  (!%p5224_p11), %s6067_s1, 18432, %s5217_s22, [#allocation7], %s5146_s8, %s5146_s8, %s5147_s9  }
  0x29   : > { %p25_p1 = scmp.eq.s32.totalorder %s24_s26, 0  ;;  %p34_p2 = scmp.ne.s32.totalorder %s5139_s14, %s5135_s13 }
  0x2a   : > { %p35_p4 = scmp.eq.s32.totalorder %s5143_s15, 0  ;;  %p4965_p6 = scmp.lt.s32.totalorder %s5143_s15, 2 }
  0x2b   : > { %s5263_s17 = scalar_select %p25_p1, %s5139_s14, %s27_s25  }
  0x2c   : > { %p36_p8 = por %p35_p4, %p34_p2  ;;  %p6100_p10 = scmp.eq.s32.totalorder %s5194_s16, 1 }
  0x2d   : > { %s148_s23 = sand.u32 1, %s5139_s14   ;;  %s3230_s27 = sshll.u32 %s5143_s15, 12 }
  0x2e   : > { %p5267_p12 = por %p6100_p10, %p34_p2  ;;  %s3217_s28 = sshll.u32 %s148_s23, 8 }
  0x2f   : > { %s5276_s4 = scalar_lea.hbm %s6066_s0, %s3230_s27  ;;  %s152_s22 = scalar_lea.vmem [#allocation3], %s3217_s28 }
  0x30   : > { %s159_s25 = sshll.u32 %s152_s22, 4  ;;  %p5278_p11 = pnand %p4965_p6, %p36_p8  ;;  %s5282_s25 = int_to_ptr.vmem [resolvable:$true] %s159_s25 }
  0x31   : > { %s5284_s5 = scalar_lea.sflag [#allocation4], %s148_s23  ;;  %s5043_s6 = scalar_lea.hbm %s5276_s4, 4096 }
  0x32   : > { %p5044_p13 = scmp.ne.s32.totalorder %s5276_s4, %s5043_s6  ;;  %p5045_p0 = pneg %p5278_p11 }
  0x33   : > { %s5048_s11 = scalar_lea.hbm %s6066_s0, 8192  ;;  %p5049_p7 = scmp.lt.u32.totalorder %s5276_s4, %s6066_s0 }
  0x34   : > { %p5046_p3 = pnand %p5045_p0, %p5044_p13  ;;  %p5050_p9 = scmp.lt.u32.totalorder %s5048_s11, %s5043_s6 }
  0x35   : > { %p5052_p2 = scmp.lt.u32.totalorder %s5043_s6, %s5276_s4 }
  0x36   : > { %p5047_p5 = pneg %p5046_p3  ;;  %p5051_p1 = por %p5050_p9, %p5049_p7 }
  0x38   : > { %p5053_p4 = por %p5052_p2, %p5051_p1 }
  0x3a   : > { %p5054_p6 = pnand %p5053_p4, %p5047_p5 }
  0x3c   : > { %5057 = shalt.err (!%p5054_p6)
}
  0x3d   : > { %s5058_s23 = scalar_lea.vmem %s5282_s25, 4096  ;;  %s5148_s29 = smov [#allocation3]  }
  0x3e   : > { %p5059_p8 = scmp.ne.s32.totalorder %s5282_s25, %s5058_s23  ;;  %s5063_s30 = sshll.u32 %s5148_s29, 4  ;;  %s5064_s30 = int_to_ptr.vmem [resolvable:$false] %s5063_s30 }
  0x3f   : > { %s5065_s22 = scalar_lea.vmem %s5064_s30, 8192  ;;  %p5066_p3 = scmp.lt.s32.totalorder %s5282_s25, %s5064_s30 }
  0x40   : > { %p5061_p10 = pnand %p5059_p8, %p5045_p0  ;;  %p5067_p7 = scmp.lt.s32.totalorder %s5065_s22, %s5058_s23 }
  0x42   : > { %p5062_p13 = pneg %p5061_p10  ;;  %p5068_p9 = por %p5067_p7, %p5066_p3 }
  0x44   : > { %p5069_p1 = pnand %p5068_p9, %p5062_p13 }
  0x46   : > { %5072 = shalt.err (!%p5069_p1)
}
  0x47   : > { %4959 = dma.hbm_to_vmem [thread:$0]  (!%p5278_p11), %s5276_s4, 4096, %s5282_s25, %s5284_s5, %s5146_s8, %s5146_s8, %s5147_s9  }
  0x48   : > { %p6103_p0 = scmp.ne.s32.totalorder %s6098_s20, 0 }
  0x4a   : > { %171 = sbr.rel (%p6103_p0) target bundleno = 642 (0x282), region = 32 }
  0x51   : > { %s5318_s6 = sand.u32 1, %s5135_s13   ;;  %p6104_p5 = scmp.ne.s32.totalorder %s6096_s18, 0 }
  0x52   : > { %s3221_s7 = sshll.u32 %s5318_s6, 8  ;;  %s174_s10 = scalar_lea.sflag [#allocation4], %s5318_s6 }
  0x53   : > { %s5324_s26 = scalar_lea.vmem [#allocation3], %s3221_s7 }
  0x54   : > { %5118 = dma.done.wait (%p6104_p5), %s174_s10, 4096  }
  0x55   : > { %5120 = vsyncadd (%p6104_p5), %s174_s10, 4294963200  ;;  %p6105_p11 = scmp.eq.s32.totalorder %s5194_s16, 0 }
  0x57   : > { %5122 = dma.done.wait (%p6105_p11), [#allocation7], 18432   ;;  %p6106_p2 = pmov %p6105_p11 }
  0x58   : > { %v5149_v0 = vmov 0.0   ;;  %v404_v1 = vld [vmem:[#allocation6 + $0x80] sm:$0xff]  ;;  %v405_v2 = vld [vmem:[#allocation6 + $0x88] sm:$0xff]  ;;  %v406_v6 = vld [vmem:[#allocation6 + $0x90] sm:$0xff]  ;;  %s5947_s8 = scalar_lea.vmem [#allocation8], %s3221_s7  ;;  %s3231_s9 = sshll.u32 %s5194_s16, 12 }
  0x59   : > { %5124 = vsyncadd (%p6106_p2), [#allocation7], 4294948864  ;;  %204 = vst [vmem:[#allocation2] sm:$0xff] %v5149_v0  ;;  %v1515_v3 = vld [vmem:[#allocation6 + $0x200] sm:$0xff]  ;;  %v4384_v4 = vpack.c.bf16 %v405_v2, %v404_v1  ;;  %v1516_v5 = vld [vmem:[#allocation6 + $0x208] sm:$0xff]  ;;  %s3130_s4 = sshll.u32 %s5947_s8, 4  ;;  %s6018_s11 = scalar_lea.hbm %s6069_s3, %s3231_s9  ;;  %s6020_s4 = int_to_ptr.vmem [resolvable:$true] %s3130_s4 }
  0x5a   : > { %205 = vst [vmem:[#allocation2 + $0x8] sm:$0xff] %v5149_v0  ;;  %206 = vst [vmem:[#allocation2 + $0x10] sm:$0x3] %v5149_v0  ;;  %v407_v7 = vld [vmem:[#allocation6 + $0x98] sm:$0xff]  ;;  %v5388_v8 = vpack.c.bf16 %v1516_v5, %v1515_v3  ;;  %v1517_v10 = vld [vmem:[#allocation6 + $0x210] sm:$0xff]  ;;  %s3117_s16 = scalar_lea.sflag [#allocation5], %s5318_s6 }
  0x5b   : > { %207 = vst [vmem:[#allocation2 + $0x18] sm:$0xff] %v5149_v0  ;;  %208 = vst [vmem:[#allocation2 + $0x20] sm:$0xff] %v5149_v0  ;;  %v4388_v9 = vpack.c.bf16 %v407_v7, %v406_v6  ;;  %v1518_v11 = vld [vmem:[#allocation6 + $0x218] sm:$0xff]  ;;  %v408_v12 = vld [vmem:[#allocation6 + $0xa0] sm:$0xff]  ;;  %4385 = vmatprep.subr.bf16.mxu1 %v4384_v4  ;;  %s5073_s27 = scalar_lea.vmem %s6020_s4, 4096  ;;  %s5150_s28 = smov [#allocation8]  }
  0x5c   : > { %209 = vst [vmem:[#allocation2 + $0x28] sm:$0x3] %v5149_v0  ;;  %210 = vst [vmem:[#allocation2 + $0x30] sm:$0xff] %v5149_v0  ;;  %v5390_v13 = vpack.c.bf16 %v1518_v11, %v1517_v10  ;;  %v409_v14 = vld [vmem:[#allocation6 + $0xa8] sm:$0xff]  ;;  %v1519_v15 = vld [vmem:[#allocation6 + $0x220] sm:$0xff]  ;;  %4513 = vmatprep.subr.bf16.mxu0 %v5388_v8  ;;  %4387 = vmatpush3.bf16.msra.mxu1 %v4384_v4  ;;  %p5074_p4 = scmp.ne.s32.totalorder %s6020_s4, %s5073_s27  ;;  %s5077_s23 = sshll.u32 %s5150_s28, 4  ;;  %s5078_s23 = int_to_ptr.vmem [resolvable:$false] %s5077_s23 }
  0x5d   : > { %211 = vst [vmem:[#allocation2 + $0x38] sm:$0xff] %v5149_v0  ;;  %212 = vst [vmem:[#allocation2 + $0x40] sm:$0x3] %v5149_v0  ;;  %v1520_v16 = vld [vmem:[#allocation6 + $0x228] sm:$0xff]  ;;  %4515 = vmatpush3.bf16.msra.mxu0 %v5388_v8  ;;  %4389 = vmatprep.subr.bf16.mxu1 %v4388_v9  ;;  %v4392_v17 = vpack.c.bf16 %v409_v14, %v408_v12  ;;  %v410_v19 = vld [vmem:[#allocation6 + $0xb0] sm:$0xff]  ;;  %s5079_s29 = scalar_lea.vmem %s5078_s23, 8192  ;;  %p5080_p10 = scmp.lt.s32.totalorder %s6020_s4, %s5078_s23 }
  0x5e   : > { %213 = vst [vmem:[#allocation2 + $0x48] sm:$0xff] %v5149_v0  ;;  %214 = vst [vmem:[#allocation2 + $0x50] sm:$0xff] %v5149_v0  ;;  %4517 = vmatprep.subr.bf16.mxu0 %v5390_v13  ;;  %v5395_v18 = vpack.c.bf16 %v1520_v16, %v1519_v15  ;;  %v411_v20 = vld [vmem:[#allocation6 + $0xb8] sm:$0xff]  ;;  %v1521_v21 = vld [vmem:[#allocation6 + $0x230] sm:$0xff]  ;;  %p5075_p6 = pnand %p5074_p4, %p5267_p12  ;;  %p5081_p13 = scmp.lt.s32.totalorder %s5079_s29, %s5073_s27 }
  0x5f   : > { %215 = vst [vmem:[#allocation2 + $0x58] sm:$0x3] %v5149_v0  ;;  %216 = vst [vmem:[#allocation2 + $0x60] sm:$0xff] %v5149_v0  ;;  %v1522_v22 = vld [vmem:[#allocation6 + $0x238] sm:$0xff]  ;;  %v4396_v23 = vpack.c.bf16 %v411_v20, %v410_v19  ;;  %v412_v25 = vld [vmem:[#allocation6 + $0xc0] sm:$0xff] }
  0x60   : > { %217 = vst [vmem:[#allocation2 + $0x68] sm:$0xff] %v5149_v0  ;;  %218 = vst [vmem:[#allocation2 + $0x70] sm:$0x3] %v5149_v0  ;;  %4391 = vmatpush3.bf16.msra.mxu1 %v4388_v9  ;;  %v5399_v24 = vpack.c.bf16 %v1522_v22, %v1521_v21  ;;  %v413_v26 = vld [vmem:[#allocation6 + $0xc8] sm:$0xff]  ;;  %v1523_v28 = vld [vmem:[#allocation6 + $0x240] sm:$0xff]  ;;  %p5076_p8 = pneg %p5075_p6  ;;  %p5082_p3 = por %p5081_p13, %p5080_p10 }
  0x61   : > { %219 = vst [vmem:[#allocation2 + $0x78] sm:$0xff] %v5149_v0  ;;  %220 = vst [vmem:[#allocation2 + $0x80] sm:$0xff] %v5149_v0  ;;  %4519 = vmatpush3.bf16.msra.mxu0 %v5390_v13  ;;  %4393 = vmatprep.subr.bf16.mxu1 %v4392_v17  ;;  %v371_v27 = vld [vmem:[#allocation2 + $0x1] sm:$0xff]  ;;  %v1524_v29 = vld [vmem:[#allocation6 + $0x248] sm:$0xff]  ;;  %v4400_v32 = vpack.c.bf16 %v413_v26, %v412_v25 }
  0x62   : > { %221 = vst [vmem:[#allocation2 + $0x88] sm:$0x3] %v5149_v0  ;;  %222 = vst [vmem:[#allocation2 + $0x90] sm:$0xff] %v5149_v0  ;;  %4521 = vmatprep.subr.bf16.mxu0 %v5395_v18  ;;  %3696 = vmatprep.mubr.f32.mxu1 %v371_v27  ;;  %v5402_v30 = vld [vmem:[%s5324_s26] sm:$0xff]  ;;  %v5407_v31 = vld [vmem:[%s5324_s26 + $0x8] sm:$0xff]  ;;  %v5418_v35 = vpack.c.bf16 %v1524_v29, %v1523_v28  ;;  %p5083_p7 = pnand %p5082_p3, %p5076_p8 }
  0x63   : > { %223 = vst [vmem:[#allocation2 + $0x98] sm:$0xff] %v5149_v0  ;;  %224 = vst [vmem:[#allocation2 + $0xa0] sm:$0x3] %v5149_v0  ;;  %4016 = vmatprep.mubr.f32.mxu0 %v5402_v30  ;;  %v5412_v33 = vld [vmem:[%s5324_s26 + $0x10] sm:$0xff]  ;;  %v5415_v34 = vld [vmem:[%s5324_s26 + $0x18] sm:$0xff] }
  0x64   : > { %225 = vst [vmem:[#allocation2 + $0xa8] sm:$0xff] %v5149_v0  ;;  %226 = vst [vmem:[#allocation2 + $0xb0] sm:$0xff] %v5149_v0  ;;  %4395 = vmatpush3.bf16.msra.mxu1 %v4392_v17  ;;  %v414_v36 = vld [vmem:[#allocation6 + $0xd0] sm:$0xff]  ;;  %v415_v37 = vld [vmem:[#allocation6 + $0xd8] sm:$0xff] }
  0x65   : > { %227 = vst [vmem:[#allocation2 + $0xb8] sm:$0x3] %v5149_v0  ;;  %228 = vst [vmem:[#allocation2 + $0xc0] sm:$0xff] %v5149_v0  ;;  %4523 = vmatpush3.bf16.msra.mxu0 %v5395_v18  ;;  %4397 = vmatprep.subr.bf16.mxu1 %v4396_v23  ;;  %v5423_v38 = vld [vmem:[%s5324_s26 + $0x20] sm:$0xff]  ;;  %v1525_v39 = vld [vmem:[#allocation6 + $0x250] sm:$0xff]  ;;  %v4404_v43 = vpack.c.bf16 %v415_v37, %v414_v36 }
  0x66   : > { %229 = vst [vmem:[#allocation2 + $0xc8] sm:$0xff] %v5149_v0  ;;  %230 = vst [vmem:[#allocation2 + $0xd0] sm:$0x3] %v5149_v0  ;;  %4525 = vmatprep.subr.bf16.mxu0 %v5399_v24  ;;  %v1526_v40 = vld [vmem:[#allocation6 + $0x258] sm:$0xff]  ;;  %v5427_v41 = vld [vmem:[%s5324_s26 + $0x28] sm:$0xff] }
  0x67   : > { %231 = vst [vmem:[#allocation2 + $0xd8] sm:$0xff] %v5149_v0  ;;  %232 = vst [vmem:[#allocation2 + $0xe0] sm:$0xff] %v5149_v0  ;;  %v5431_v42 = vld [vmem:[%s5324_s26 + $0x30] sm:$0xff]  ;;  %v5436_v44 = vld [vmem:[%s5324_s26 + $0x38] sm:$0xff]  ;;  %v5439_v45 = vpack.c.bf16 %v1526_v40, %v1525_v39 }
  0x68   : > { %233 = vst [vmem:[#allocation2 + $0xe8] sm:$0x3] %v5149_v0  ;;  %234 = vst [vmem:[#allocation2 + $0xf0] sm:$0xff] %v5149_v0  ;;  %4399 = vmatpush3.bf16.msra.mxu1 %v4396_v23  ;;  %v416_v46 = vld [vmem:[#allocation6 + $0xe0] sm:$0xff]  ;;  %v417_v47 = vld [vmem:[#allocation6 + $0xe8] sm:$0xff] }
  0x69   : > { %235 = vst [vmem:[#allocation2 + $0xf8] sm:$0xff] %v5149_v0  ;;  %236 = vst [vmem:[#allocation2 + $0x100] sm:$0x3] %v5149_v0  ;;  %4527 = vmatpush3.bf16.msra.mxu0 %v5399_v24  ;;  %4401 = vmatprep.subr.bf16.mxu1 %v4400_v32  ;;  %v5443_v48 = vld [vmem:[%s5324_s26 + $0x40] sm:$0xff]  ;;  %v1528_v50 = vld [vmem:[#allocation6 + $0x268] sm:$0xff]  ;;  %v4408_v54 = vpack.c.bf16 %v417_v47, %v416_v46 }
  0x6a   : > { %237 = vst [vmem:[#allocation2 + $0x108] sm:$0xff] %v5149_v0  ;;  %238 = vst [vmem:[#allocation2 + $0x110] sm:$0xff] %v5149_v0  ;;  %4529 = vmatprep.subr.bf16.mxu0 %v5418_v35  ;;  %v1527_v49 = vld [vmem:[#allocation6 + $0x260] sm:$0xff]  ;;  %v5447_v51 = vld [vmem:[%s5324_s26 + $0x48] sm:$0xff] }
  0x6b   : > { %239 = vst [vmem:[#allocation2 + $0x118] sm:$0x3] %v5149_v0  ;;  %240 = vst [vmem:[#allocation2 + $0x120] sm:$0xff] %v5149_v0  ;;  %v5451_v52 = vld [vmem:[%s5324_s26 + $0x50] sm:$0xff]  ;;  %v5454_v53 = vld [vmem:[%s5324_s26 + $0x58] sm:$0xff]  ;;  %v5463_v57 = vpack.c.bf16 %v1528_v50, %v1527_v49 }
  0x6c   : > { %241 = vst [vmem:[#allocation2 + $0x128] sm:$0xff] %v5149_v0  ;;  %242 = vst [vmem:[#allocation2 + $0x130] sm:$0x3] %v5149_v0  ;;  %4403 = vmatpush3.bf16.msra.mxu1 %v4400_v32  ;;  %v418_v55 = vld [vmem:[#allocation6 + $0xf0] sm:$0xff]  ;;  %v5460_v56 = vld [vmem:[%s5324_s26 + $0x60] sm:$0xff] }
  0x6d   : > { %243 = vst [vmem:[#allocation2 + $0x138] sm:$0xff] %v5149_v0  ;;  %244 = vst [vmem:[#allocation2 + $0x140] sm:$0xff] %v5149_v0  ;;  %4531 = vmatpush3.bf16.msra.mxu0 %v5418_v35  ;;  %4405 = vmatprep.subr.bf16.mxu1 %v4404_v43  ;;  %v419_v58 = vld [vmem:[#allocation6 + $0xf8] sm:$0xff]  ;;  %v1529_v59 = vld [vmem:[#allocation6 + $0x270] sm:$0xff] }
  0x6e   : > { %245 = vst [vmem:[#allocation2 + $0x148] sm:$0x3] %v5149_v0  ;;  %246 = vst [vmem:[#allocation2 + $0x150] sm:$0xff] %v5149_v0  ;;  %4533 = vmatprep.subr.bf16.mxu0 %v5439_v45  ;;  %v5467_v60 = vld [vmem:[%s5324_s26 + $0x68] sm:$0xff]  ;;  %v1530_v61 = vld [vmem:[#allocation6 + $0x278] sm:$0xff]  ;;  %v4412_v1 = vpack.c.bf16 %v419_v58, %v418_v55 }
  0x6f   : > { %247 = vst [vmem:[#allocation2 + $0x158] sm:$0xff] %v5149_v0  ;;  %248 = vst [vmem:[#allocation2 + $0x160] sm:$0x3] %v5149_v0  ;;  %v5471_v62 = vld [vmem:[%s5324_s26 + $0x70] sm:$0xff]  ;;  %v5474_v63 = vld [vmem:[%s5324_s26 + $0x78] sm:$0xff]  ;;  %v5480_v2 = vpack.c.bf16 %v1530_v61, %v1529_v59 }
  0x70   : > { %249 = vst [vmem:[#allocation2 + $0x168] sm:$0xff] %v5149_v0  ;;  %250 = vst [vmem:[#allocation2 + $0x170] sm:$0xff] %v5149_v0  ;;  %4407 = vmatpush3.bf16.msra.mxu1 %v4404_v43  ;;  %v355_v3 = vld [vmem:[#allocation6] sm:$0xff]  ;;  %v356_v4 = vld [vmem:[#allocation6 + $0x8] sm:$0xff] }
  0x71   : > { %251 = vst [vmem:[#allocation2 + $0x178] sm:$0x3] %v5149_v0  ;;  %252 = vst [vmem:[#allocation2 + $0x180] sm:$0xff] %v5149_v0  ;;  %4535 = vmatpush3.bf16.msra.mxu0 %v5439_v45  ;;  %4409 = vmatprep.subr.bf16.mxu1 %v4408_v54  ;;  %v5483_v5 = vld [vmem:[%s5324_s26 + $0x80] sm:$0xff]  ;;  %v1822_v7 = vld [vmem:[#allocation6 + $0x288] sm:$0xff]  ;;  %v4416_v12 = vpack.c.bf16 %v356_v4, %v355_v3 }
  0x72   : > { %253 = vst [vmem:[#allocation2 + $0x188] sm:$0xff] %v5149_v0  ;;  %254 = vst [vmem:[#allocation2 + $0x190] sm:$0x3] %v5149_v0  ;;  %4537 = vmatprep.subr.bf16.mxu0 %v5463_v57  ;;  %v1821_v6 = vld [vmem:[#allocation6 + $0x280] sm:$0xff]  ;;  %v5487_v9 = vld [vmem:[%s5324_s26 + $0x88] sm:$0xff] }
  0x73   : > { %255 = vst [vmem:[#allocation2 + $0x198] sm:$0xff] %v5149_v0  ;;  %256 = vst [vmem:[#allocation2 + $0x1a0] sm:$0xff] %v5149_v0  ;;  %v5491_v10 = vld [vmem:[%s5324_s26 + $0x90] sm:$0xff]  ;;  %v5494_v11 = vld [vmem:[%s5324_s26 + $0x98] sm:$0xff]  ;;  %v4544_v15 = vpack.c.bf16 %v1822_v7, %v1821_v6 }
  0x74   : > { %257 = vst [vmem:[#allocation2 + $0x1a8] sm:$0x3] %v5149_v0  ;;  %6107 = vst [vmem:[#allocation12_spill] sm:$0xff] %v5399_v24  ;;  %4411 = vmatpush3.bf16.msra.mxu1 %v4408_v54  ;;  %v372_v14 = vld [vmem:[#allocation2 + $0x9] sm:$0xff]  ;;  %v1823_v16 = vld [vmem:[#allocation6 + $0x290] sm:$0xff] }
  0x75   : > { %291 = vst [vmem:[#allocation2 + $0x19] sm:$0xff] %v5402_v30  ;;  %292 = vst [vmem:[#allocation2 + $0x21] sm:$0xff] %v5407_v31  ;;  %4539 = vmatpush3.bf16.msra.mxu0 %v5463_v57  ;;  %4413 = vmatprep.subr.bf16.mxu1 %v4412_v1  ;;  %v5501_v17 = vld [vmem:[%s5324_s26 + $0xa0] sm:$0xff]  ;;  %v1824_v19 = vld [vmem:[#allocation6 + $0x298] sm:$0xff] }
  0x76   : > { %6108 = vst [vmem:[#allocation13_spill] sm:$0xff] %v5418_v35  ;;  %293 = vst [vmem:[#allocation2 + $0x31] sm:$0xff] %v5412_v33  ;;  %4541 = vmatprep.subr.bf16.mxu0 %v5480_v2  ;;  %v357_v20 = vld [vmem:[#allocation6 + $0x10] sm:$0xff]  ;;  %v5505_v21 = vld [vmem:[%s5324_s26 + $0xa8] sm:$0xff]  ;;  %v4548_v26 = vpack.c.bf16 %v1824_v19, %v1823_v16 }
  0x77   : > { %294 = vst [vmem:[#allocation2 + $0x39] sm:$0xff] %v5415_v34  ;;  %295 = vst [vmem:[#allocation2 + $0x49] sm:$0xff] %v5423_v38  ;;  %v358_v22 = vld [vmem:[#allocation6 + $0x18] sm:$0xff]  ;;  %v5509_v23 = vld [vmem:[%s5324_s26 + $0xb0] sm:$0xff] }
  0x78   : > { %296 = vst [vmem:[#allocation2 + $0x51] sm:$0xff] %v5427_v41  ;;  %297 = vst [vmem:[#allocation2 + $0x61] sm:$0xff] %v5431_v42  ;;  %4415 = vmatpush3.bf16.msra.mxu1 %v4412_v1  ;;  %v5512_v25 = vld [vmem:[%s5324_s26 + $0xb8] sm:$0xff]  ;;  %v1825_v27 = vld [vmem:[#allocation6 + $0x2a0] sm:$0xff]  ;;  %v4420_v29 = vpack.c.bf16 %v358_v22, %v357_v20 }
  0x79   : > { %6109 = vst [vmem:[#allocation14_spill] sm:$0xff] %v5439_v45  ;;  %298 = vst [vmem:[#allocation2 + $0x69] sm:$0xff] %v5436_v44  ;;  %4543 = vmatpush3.bf16.msra.mxu0 %v5480_v2  ;;  %4417 = vmatprep.subr.bf16.mxu1 %v4416_v12  ;;  %v5518_v28 = vld [vmem:[%s5324_s26 + $0xc0] sm:$0xff]  ;;  %v1826_v32 = vld [vmem:[#allocation6 + $0x2a8] sm:$0xff] }
  0x7a   : > { %299 = vst [vmem:[#allocation2 + $0x79] sm:$0xff] %v5443_v48  ;;  %300 = vst [vmem:[#allocation2 + $0x81] sm:$0xff] %v5447_v51  ;;  %4545 = vmatprep.subr.bf16.mxu0 %v4544_v15  ;;  %v359_v36 = vld [vmem:[#allocation6 + $0x20] sm:$0xff]  ;;  %v5522_v37 = vld [vmem:[%s5324_s26 + $0xc8] sm:$0xff]  ;;  %v4552_v46 = vpack.c.bf16 %v1826_v32, %v1825_v27 }
  0x7b   : > { %301 = vst [vmem:[#allocation2 + $0x91] sm:$0xff] %v5451_v52  ;;  %302 = vst [vmem:[#allocation2 + $0x99] sm:$0xff] %v5454_v53  ;;  %3697 = vmatmul.mubr.f32.vlgmr.msra.gmra.mrb[0].mxu1 %v372_v14  ;;  %v360_v39 = vld [vmem:[#allocation6 + $0x28] sm:$0xff]  ;;  %v5527_v40 = vld [vmem:[%s5324_s26 + $0xd0] sm:$0xff] }
  0x7c   : > { %6110 = vst [vmem:[#allocation15_spill] sm:$0xff] %v5463_v57  ;;  %303 = vst [vmem:[#allocation2 + $0xa9] sm:$0xff] %v5460_v56  ;;  %4017 = vmatmul.mubr.f32.vlgmr.msra.gmra.mrb[0].mxu0 %v5407_v31  ;;  %4419 = vmatpush3.bf16.msra.mxu1 %v4416_v12  ;;  %v5530_v43 = vld [vmem:[%s5324_s26 + $0xd8] sm:$0xff]  ;;  %v5537_v47 = vld [vmem:[%s5324_s26 + $0xe0] sm:$0xff]  ;;  %v4424_v54 = vpack.c.bf16 %v360_v39, %v359_v36 }
  0x7d   : > { %304 = vst [vmem:[#allocation2 + $0xb1] sm:$0xff] %v5467_v60  ;;  %305 = vst [vmem:[#allocation2 + $0xc1] sm:$0xff] %v5471_v62  ;;  %4547 = vmatpush3.bf16.msra.mxu0 %v4544_v15  ;;  %3699 = vmatprep.mubr.f32.mxu1 %v5402_v30  ;;  %v1827_v49 = vld [vmem:[#allocation6 + $0x2b0] sm:$0xff]  ;;  %v1828_v50 = vld [vmem:[#allocation6 + $0x2b8] sm:$0xff] }
  0x7e   : > { %306 = vst [vmem:[#allocation2 + $0xc9] sm:$0xff] %v5474_v63  ;;  %6111 = vst [vmem:[#allocation16_spill] sm:$0xff] %v5480_v2  ;;  %4019 = vmatprep.mubr.f32.mxu0 %v5412_v33  ;;  %4549 = vmatprep.subr.bf16.mxu0 %v4548_v26  ;;  %v5542_v55 = vld [vmem:[%s5324_s26 + $0xe8] sm:$0xff]  ;;  %v361_v30 = vld [vmem:[#allocation6 + $0x30] sm:$0xff] }
  0x7f   : > { %307 = vst [vmem:[#allocation2 + $0xd9] sm:$0xff] %v5483_v5  ;;  %308 = vst [vmem:[#allocation2 + $0xe1] sm:$0xff] %v5487_v9  ;;  %3700 = vmatmul.mubr.f32.gmra.mrb[2].mxu1 %v5407_v31  ;;  %4421 = vmatprep.subr.bf16.mxu1 %v4420_v29  ;;  %v362_v58 = vld [vmem:[#allocation6 + $0x38] sm:$0xff]  ;;  %v4556_v31 = vpack.c.bf16 %v1828_v50, %v1827_v49  ;;  %v1829_v59 = vld [vmem:[#allocation6 + $0x2c0] sm:$0xff] }
  0x80   : > { %309 = vst [vmem:[#allocation2 + $0xf1] sm:$0xff] %v5491_v10  ;;  %310 = vst [vmem:[#allocation2 + $0xf9] sm:$0xff] %v5494_v11  ;;  %4020 = vmatmul.mubr.f32.gmra.mrb[2].mxu0 %v5415_v34  ;;  %3702 = vmatprep.mubr.f32.mxu1 %v5412_v33  ;;  %v1830_v61 = vld [vmem:[#allocation6 + $0x2c8] sm:$0xff]  ;;  %v4428_v1 = vpack.c.bf16 %v362_v58, %v361_v30  ;;  %v363_v33 = vld [vmem:[#allocation6 + $0x40] sm:$0xff] }
  0x81   : > { %311 = vst [vmem:[#allocation2 + $0x109] sm:$0xff] %v5501_v17  ;;  %312 = vst [vmem:[#allocation2 + $0x111] sm:$0xff] %v5505_v21  ;;  %4551 = vmatpush3.bf16.msra.mxu0 %v4548_v26  ;;  %4022 = vmatprep.mubr.f32.mxu0 %v5423_v38  ;;  %v364_v3 = vld [vmem:[#allocation6 + $0x48] sm:$0xff]  ;;  %v4560_v4 = vpack.c.bf16 %v1830_v61, %v1829_v59  ;;  %v1831_v6 = vld [vmem:[#allocation6 + $0x2d0] sm:$0xff] }
  0x82   : > { %313 = vst [vmem:[#allocation2 + $0x121] sm:$0xff] %v5509_v23  ;;  %314 = vst [vmem:[#allocation2 + $0x129] sm:$0xff] %v5512_v25  ;;  %4553 = vmatprep.subr.bf16.mxu0 %v4552_v46  ;;  %4423 = vmatpush3.bf16.msra.mxu1 %v4420_v29  ;;  %v4432_v7 = vpack.c.bf16 %v364_v3, %v363_v33  ;;  %v365_v12 = vld [vmem:[#allocation6 + $0x50] sm:$0xff]  ;;  %v1834_v15 = vld [vmem:[#allocation6 + $0x2e8] sm:$0xff] }
  0x83   : > { %315 = vst [vmem:[#allocation2 + $0x139] sm:$0xff] %v5518_v28  ;;  %316 = vst [vmem:[#allocation2 + $0x141] sm:$0xff] %v5522_v37  ;;  %3703 = vmatmul.mubr.f32.gmra.mrb[4].mxu1 %v5415_v34  ;;  %4425 = vmatprep.subr.bf16.mxu1 %v4424_v54  ;;  %v1832_v34 = vld [vmem:[#allocation6 + $0x2d8] sm:$0xff]  ;;  %v368_v19 = vld [vmem:[#allocation6 + $0x68] sm:$0xff] }
  0x84   : > { %317 = vst [vmem:[#allocation2 + $0x151] sm:$0xff] %v5527_v40  ;;  %318 = vst [vmem:[#allocation2 + $0x159] sm:$0xff] %v5530_v43  ;;  %4023 = vmatmul.mubr.f32.gmra.mrb[4].mxu0 %v5427_v41  ;;  %3705 = vmatprep.mubr.f32.mxu1 %v5423_v38  ;;  %v366_v38 = vld [vmem:[#allocation6 + $0x58] sm:$0xff]  ;;  %v4564_v14 = vpack.c.bf16 %v1832_v34, %v1831_v6  ;;  %v5561_v22 = vld [vmem:[%s5324_s26 + $0xf0] sm:$0xff] }
  0x85   : > { %319 = vst [vmem:[#allocation2 + $0x169] sm:$0xff] %v5537_v47  ;;  %320 = vst [vmem:[#allocation2 + $0x171] sm:$0xff] %v5542_v55  ;;  %4555 = vmatpush3.bf16.msra.mxu0 %v4552_v46  ;;  %4025 = vmatprep.mubr.f32.mxu0 %v5431_v42  ;;  %v4436_v16 = vpack.c.bf16 %v366_v38, %v365_v12  ;;  %v5564_v26 = vld [vmem:[%s5324_s26 + $0xf8] sm:$0xff]  ;;  %v2129_v39 = vld [vmem:[#allocation6 + $0x308] sm:$0xff] }
  0x86   : > { %4557 = vmatprep.subr.bf16.mxu0 %v4556_v31  ;;  %4427 = vmatpush3.bf16.msra.mxu1 %v4424_v54  ;;  %6112 = vst [vmem:[#allocation17_spill] sm:$0xff] %v5561_v22  ;;  %6113 = vst [vmem:[#allocation18_spill] sm:$0xff] %v5564_v26  ;;  %v1836_v27 = vld [vmem:[#allocation6 + $0x2f8] sm:$0xff]  ;;  %v903_v49 = vld [vmem:[#allocation6 + $0x100] sm:$0xff] }
  0x87   : > { %3706 = vmatmul.mubr.f32.gmra.mrb[6].mxu1 %v5427_v41  ;;  %4429 = vmatprep.subr.bf16.mxu1 %v4428_v1  ;;  %v1833_v41 = vld [vmem:[#allocation6 + $0x2e0] sm:$0xff]  ;;  %321 = vst [vmem:[#allocation2 + $0x181] sm:$0xff] %v5561_v22  ;;  %322 = vst [vmem:[#allocation2 + $0x189] sm:$0xff] %v5564_v26  ;;  %v370_v32 = vld [vmem:[#allocation6 + $0x78] sm:$0xff] }
  0x88   : > { %4026 = vmatmul.mubr.f32.gmra.mrb[6].mxu0 %v5436_v44  ;;  %3708 = vmatprep.mubr.f32.mxu1 %v5431_v42  ;;  %v367_v42 = vld [vmem:[#allocation6 + $0x60] sm:$0xff]  ;;  %v4568_v20 = vpack.c.bf16 %v1834_v15, %v1833_v41  ;;  %v5576_v50 = vld [vmem:[#allocation2 + $0x1a] sm:$0xff]  ;;  %v2131_v30 = vld [vmem:[#allocation6 + $0x318] sm:$0xff] }
  0x89   : > { %4559 = vmatpush3.bf16.msra.mxu0 %v4556_v31  ;;  %4028 = vmatprep.mubr.f32.mxu0 %v5443_v48  ;;  %v4440_v29 = vpack.c.bf16 %v368_v19, %v367_v42  ;;  %v5586_v31 = vld [vmem:[#allocation2 + $0x32] sm:$0xff]  ;;  %v2135_v3 = vld [vmem:[#allocation6 + $0x338] sm:$0xff]  ;;  %v2138_v38 = vld [vmem:[#allocation6 + $0x350] sm:$0xff] }
  0x8a   : > { %4561 = vmatprep.subr.bf16.mxu0 %v4560_v4  ;;  %4431 = vmatpush3.bf16.msra.mxu1 %v4428_v1  ;;  %v2133_v61 = vld [vmem:[#allocation6 + $0x328] sm:$0xff]  ;;  %v5595_v1 = vld [vmem:[#allocation2 + $0x4a] sm:$0xff]  ;;  %v2142_v19 = vld [vmem:[#allocation6 + $0x370] sm:$0xff] }
  0x8b   : > { %3709 = vmatmul.mubr.f32.gmra.mrb[8].mxu1 %v5436_v44  ;;  %4433 = vmatprep.subr.bf16.mxu1 %v4432_v7  ;;  %v1835_v44 = vld [vmem:[#allocation6 + $0x2f0] sm:$0xff]  ;;  %v2136_v34 = vld [vmem:[#allocation6 + $0x340] sm:$0xff]  ;;  %v5740_v26 = vld [vmem:[#allocation2 + $0xc8] sm:$0xff] }
  0x8c   : > { %4029 = vmatmul.mubr.f32.gmra.mrb[8].mxu0 %v5447_v51  ;;  %3711 = vmatprep.mubr.f32.mxu1 %v5443_v48  ;;  %v369_v48 = vld [vmem:[#allocation6 + $0x70] sm:$0xff]  ;;  %v4572_v36 = vpack.c.bf16 %v1836_v27, %v1835_v44  ;;  %v2140_v15 = vld [vmem:[#allocation6 + $0x360] sm:$0xff]  ;;  %6123 = vst [vmem:[#allocation28_spill] sm:$0xff] %v5740_v26  ;;  %v5743_v57 = vld [vmem:[#allocation2 + $0xd8] sm:$0xff] }
  0x8d   : > { %4563 = vmatpush3.bf16.msra.mxu0 %v4560_v4  ;;  %4031 = vmatprep.mubr.f32.mxu0 %v5451_v52  ;;  %v4444_v46 = vpack.c.bf16 %v370_v32, %v369_v48  ;;  %v5603_v4 = vld [vmem:[#allocation2 + $0x62] sm:$0xff]  ;;  %v2434_v27 = vld [vmem:[#allocation6 + $0x380] sm:$0xff]  ;;  %6124 = vst [vmem:[#allocation29_spill] sm:$0xff] %v5743_v57  ;;  %v5758_v22 = vld [vmem:[#allocation2 + $0xf8] sm:$0xff] }
  0x8e   : > { %4565 = vmatprep.subr.bf16.mxu0 %v4564_v14  ;;  %4435 = vmatpush3.bf16.msra.mxu1 %v4432_v7  ;;  %v2137_v7 = vld [vmem:[#allocation6 + $0x348] sm:$0xff]  ;;  %v905_v32 = vld [vmem:[#allocation6 + $0x110] sm:$0xff]  ;;  %v5766_v35 = vld [vmem:[#allocation2 + $0x110] sm:$0xff] }
  0x8f   : > { %3712 = vmatmul.mubr.f32.gmra.mrb[10].mxu1 %v5447_v51  ;;  %4437 = vmatprep.subr.bf16.mxu1 %v4436_v16  ;;  %v2128_v51 = vld [vmem:[#allocation6 + $0x300] sm:$0xff]  ;;  %v4592_v12 = vpack.c.bf16 %v2137_v7, %v2136_v34  ;;  %v5734_v2 = vld [vmem:[#allocation2 + $0xc0] sm:$0xff] }
  0x90   : > { %4032 = vmatmul.mubr.f32.gmra.mrb[10].mxu0 %v5454_v53  ;;  %3714 = vmatprep.mubr.f32.mxu1 %v5451_v52  ;;  %v904_v52 = vld [vmem:[#allocation6 + $0x108] sm:$0xff]  ;;  %v4576_v54 = vpack.c.bf16 %v2129_v39, %v2128_v51  ;;  %v5686_v34 = vld [vmem:[#allocation2 + $0x50] sm:$0xff]  ;;  %6122 = vst [vmem:[#allocation27_spill] sm:$0xff] %v5734_v2  ;;  %v5769_v24 = vld [vmem:[#allocation2 + $0x120] sm:$0xff] }
  0x91   : > { %4567 = vmatpush3.bf16.msra.mxu0 %v4564_v14  ;;  %4034 = vmatprep.mubr.f32.mxu0 %v5460_v56  ;;  %v5579_v58 = vpack.c.bf16 %v904_v52, %v903_v49  ;;  %v2139_v14 = vld [vmem:[#allocation6 + $0x358] sm:$0xff]  ;;  %v5655_v51 = vld [vmem:[#allocation2 + $0xf2] sm:$0xff]  ;;  %v5661_v49 = vld [vmem:[#allocation2 + $0x20] sm:$0xff] }
  0x92   : > { %4569 = vmatprep.subr.bf16.mxu0 %v4568_v20  ;;  %4439 = vmatpush3.bf16.msra.mxu1 %v4436_v16  ;;  %v4596_v41 = vpack.c.bf16 %v2139_v14, %v2138_v38  ;;  %v2141_v16 = vld [vmem:[#allocation6 + $0x368] sm:$0xff]  ;;  %v5689_v7 = vld [vmem:[#allocation2 + $0x12a] sm:$0xff] }
  0x93   : > { %3715 = vmatmul.mubr.f32.gmra.mrb[12].mxu1 %v5454_v53  ;;  %4441 = vmatprep.subr.bf16.mxu1 %v4440_v29  ;;  %v2130_v53 = vld [vmem:[#allocation6 + $0x310] sm:$0xff]  ;;  %v4600_v42 = vpack.c.bf16 %v2141_v16, %v2140_v15  ;;  %v914_v15 = vld [vmem:[#allocation6 + $0x158] sm:$0xff] }
  0x94   : > { %4035 = vmatmul.mubr.f32.gmra.mrb[12].mxu0 %v5467_v60  ;;  %3717 = vmatprep.mubr.f32.mxu1 %v5460_v56  ;;  %v5584_v56 = vld [vmem:[#allocation2 + $0x22] sm:$0xff]  ;;  %v4580_v59 = vpack.c.bf16 %v2131_v30, %v2130_v53  ;;  %v5665_v52 = vld [vmem:[#allocation2 + $0xfa] sm:$0xff]  ;;  %v5669_v53 = vld [vmem:[#allocation2 + $0x10a] sm:$0xff] }
  0x95   : > { %4571 = vmatpush3.bf16.msra.mxu0 %v4568_v20  ;;  %4037 = vmatprep.mubr.f32.mxu0 %v5471_v62  ;;  %v2143_v20 = vld [vmem:[#allocation6 + $0x378] sm:$0xff]  ;;  %v909_v30 = vld [vmem:[#allocation6 + $0x130] sm:$0xff] }
  0x96   : > { %4573 = vmatprep.subr.bf16.mxu0 %v4572_v36  ;;  %4443 = vmatpush3.bf16.msra.mxu1 %v4440_v29  ;;  %v4604_v44 = vpack.c.bf16 %v2143_v20, %v2142_v19  ;;  %v2435_v29 = vld [vmem:[#allocation6 + $0x388] sm:$0xff]  ;;  %v5698_v16 = vld [vmem:[#allocation2 + $0x68] sm:$0xff] }
  0x97   : > { %3718 = vmatmul.mubr.f32.gmra.mrb[14].mxu1 %v5467_v60  ;;  %4445 = vmatprep.subr.bf16.mxu1 %v4444_v46  ;;  %v2132_v60 = vld [vmem:[#allocation6 + $0x320] sm:$0xff]  ;;  %v5645_v48 = vpack.c.bf16 %v2435_v29, %v2434_v27  ;;  %v5693_v38 = vld [vmem:[#allocation2 + $0x13a] sm:$0xff]  ;;  %6115 = vst [vmem:[#allocation20_spill] sm:$0xff] %v5698_v16 }
  0x98   : > { %4038 = vmatmul.mubr.f32.gmra.mrb[14].mxu0 %v5474_v63  ;;  %3720 = vmatprep.mubr.f32.mxu1 %v5471_v62  ;;  %v5593_v62 = vld [vmem:[#allocation2 + $0x3a] sm:$0xff]  ;;  %v4584_v33 = vpack.c.bf16 %v2133_v61, %v2132_v60  ;;  %v5677_v60 = vld [vmem:[#allocation2 + $0x112] sm:$0xff]  ;;  %v5679_v61 = vld [vmem:[#allocation2 + $0x48] sm:$0xff] }
  0x99   : > { %4575 = vmatpush3.bf16.msra.mxu0 %v4572_v36  ;;  %4096 = vmatprep.mubr.f32.mxu0 %v5576_v50  ;;  %v5653_v36 = vld [vmem:[#allocation2 + $0x18] sm:$0xff]  ;;  %v915_v27 = vld [vmem:[#allocation6 + $0x160] sm:$0xff] }
  0x9a   : > { %4577 = vmatprep.subr.bf16.mxu0 %v4576_v54  ;;  %4447 = vmatpush3.bf16.msra.mxu1 %v4444_v46  ;;  %v908_v46 = vld [vmem:[#allocation6 + $0x128] sm:$0xff] }
  0x9b   : > { %3721 = vmatmul.mubr.f32.gmra.mrb[16].mxu1 %v5474_v63  ;;  %4449 = vmatprep.subr.bf16.mxu1 %v5579_v58  ;;  %v2134_v63 = vld [vmem:[#allocation6 + $0x330] sm:$0xff]  ;;  %v5703_v19 = vld [vmem:[#allocation2 + $0x78] sm:$0xff] }
  0x9c   : > { %4097 = vmatmul.mubr.f32.vlgmr.msra.gmra.mrb[0].mxu0 %v5584_v56  ;;  %3723 = vmatprep.mubr.f32.mxu1 %v5483_v5  ;;  %v5601_v5 = vld [vmem:[#allocation2 + $0x52] sm:$0xff]  ;;  %v4588_v6 = vpack.c.bf16 %v2135_v3, %v2134_v63  ;;  %6116 = vst [vmem:[#allocation21_spill] sm:$0xff] %v5703_v19 }
  0x9d   : > { %4579 = vmatpush3.bf16.msra.mxu0 %v4576_v54  ;;  %4099 = vmatprep.mubr.f32.mxu0 %v5586_v31  ;;  %v5667_v54 = vld [vmem:[#allocation2 + $0x30] sm:$0xff]  ;;  %v916_v29 = vld [vmem:[#allocation6 + $0x168] sm:$0xff] }
  0x9e   : > { %4581 = vmatprep.subr.bf16.mxu0 %v4580_v59  ;;  %v911_v3 = vld [vmem:[#allocation6 + $0x140] sm:$0xff] }
  0x9f   : > { %3724 = vmatmul.mubr.f32.gmra.mrb[18].mxu1 %v5487_v9  ;;  %v5609_v9 = vld [vmem:[#allocation2 + $0x6a] sm:$0xff]  ;;  %v5705_v20 = vld [vmem:[#allocation2 + $0x152] sm:$0xff] }
  0xa0   : > { %4100 = vmatmul.mubr.f32.gmra.mrb[2].mxu0 %v5593_v62  ;;  %3726 = vmatprep.mubr.f32.mxu1 %v5491_v10  ;;  %v5611_v10 = vld [vmem:[#allocation2 + $0x7a] sm:$0xff] }
  0xa1   : > { %4102 = vmatprep.mubr.f32.mxu0 %v5595_v1  ;;  %4583 = vmatpush3.bf16.msra.mxu0 %v4580_v59  ;;  %v910_v59 = vld [vmem:[#allocation6 + $0x138] sm:$0xff] }
  0xa2   : > { %4585 = vmatprep.subr.bf16.mxu0 %v4584_v33  ;;  %v4460_v63 = vpack.c.bf16 %v910_v59, %v909_v30  ;;  %v918_v30 = vld [vmem:[#allocation6 + $0x178] sm:$0xff]  ;;  %v5722_v59 = vld [vmem:[#allocation2 + $0x98] sm:$0xff] }
  0xa3   : > { %3727 = vmatmul.mubr.f32.gmra.mrb[20].mxu1 %v5494_v11  ;;  %v5617_v11 = vld [vmem:[#allocation2 + $0x82] sm:$0xff]  ;;  %6119 = vst [vmem:[#allocation24_spill] sm:$0xff] %v5722_v59 }
  0xa4   : > { %4103 = vmatmul.mubr.f32.gmra.mrb[4].mxu0 %v5601_v5  ;;  %3729 = vmatprep.mubr.f32.mxu1 %v5501_v17  ;;  %v5619_v17 = vld [vmem:[#allocation2 + $0x92] sm:$0xff] }
  0xa5   : > { %4105 = vmatprep.mubr.f32.mxu0 %v5603_v4  ;;  %4587 = vmatpush3.bf16.msra.mxu0 %v4584_v33  ;;  %v5681_v33 = vld [vmem:[#allocation2 + $0x122] sm:$0xff] }
  0xa6   : > { %4589 = vmatprep.subr.bf16.mxu0 %v4588_v6 }
  0xa7   : > { %3730 = vmatmul.mubr.f32.gmra.mrb[22].mxu1 %v5505_v21  ;;  %v5625_v21 = vld [vmem:[#allocation2 + $0x9a] sm:$0xff] }
  0xa8   : > { %4106 = vmatmul.mubr.f32.gmra.mrb[6].mxu0 %v5609_v9  ;;  %3732 = vmatprep.mubr.f32.mxu1 %v5509_v23  ;;  %v5627_v23 = vld [vmem:[#allocation2 + $0xaa] sm:$0xff] }
  0xa9   : > { %4108 = vmatprep.mubr.f32.mxu0 %v5611_v10  ;;  %4591 = vmatpush3.bf16.msra.mxu0 %v4588_v6  ;;  %v912_v6 = vld [vmem:[#allocation6 + $0x148] sm:$0xff] }
  0xaa   : > { %4593 = vmatprep.subr.bf16.mxu0 %v4592_v12  ;;  %v4464_v14 = vpack.c.bf16 %v912_v6, %v911_v3  ;;  %v5727_v3 = vld [vmem:[#allocation2 + $0xa8] sm:$0xff] }
  0xab   : > { %3733 = vmatmul.mubr.f32.gmra.mrb[24].mxu1 %v5512_v25  ;;  %v5633_v25 = vld [vmem:[#allocation2 + $0xb2] sm:$0xff]  ;;  %6120 = vst [vmem:[#allocation25_spill] sm:$0xff] %v5727_v3  ;;  %v1818_v6 = vld [vmem:[#allocation2 + $0x182] sm:$0xff] }
  0xac   : > { %4109 = vmatmul.mubr.f32.gmra.mrb[8].mxu0 %v5617_v11  ;;  %3735 = vmatprep.mubr.f32.mxu1 %v5518_v28  ;;  %v5635_v28 = vld [vmem:[#allocation2 + $0xc2] sm:$0xff] }
  0xad   : > { %4111 = vmatprep.mubr.f32.mxu0 %v5619_v17  ;;  %4595 = vmatpush3.bf16.msra.mxu0 %v4592_v12  ;;  %v5691_v12 = vld [vmem:[#allocation2 + $0x60] sm:$0xff] }
  0xae   : > { %4597 = vmatprep.subr.bf16.mxu0 %v4596_v41  ;;  %6114 = vst [vmem:[#allocation19_spill] sm:$0xff] %v5691_v12 }
  0xaf   : > { %3736 = vmatmul.mubr.f32.gmra.mrb[26].mxu1 %v5522_v37  ;;  %v5641_v37 = vld [vmem:[#allocation2 + $0xca] sm:$0xff] }
  0xb0   : > { %4112 = vmatmul.mubr.f32.gmra.mrb[10].mxu0 %v5625_v21  ;;  %3738 = vmatprep.mubr.f32.mxu1 %v5527_v40  ;;  %v5643_v40 = vld [vmem:[#allocation2 + $0xda] sm:$0xff] }
  0xb1   : > { %4114 = vmatprep.mubr.f32.mxu0 %v5627_v23  ;;  %4599 = vmatpush3.bf16.msra.mxu0 %v4596_v41  ;;  %v913_v41 = vld [vmem:[#allocation6 + $0x150] sm:$0xff] }
  0xb2   : > { %4601 = vmatprep.subr.bf16.mxu0 %v4600_v42 }
  0xb3   : > { %3739 = vmatmul.mubr.f32.gmra.mrb[28].mxu1 %v5530_v43  ;;  %v906_v43 = vld [vmem:[#allocation6 + $0x118] sm:$0xff] }
  0xb4   : > { %4115 = vmatmul.mubr.f32.gmra.mrb[12].mxu0 %v5633_v25  ;;  %3741 = vmatprep.mubr.f32.mxu1 %v5537_v47  ;;  %v5651_v47 = vld [vmem:[#allocation2 + $0xe2] sm:$0xff]  ;;  %v4452_v39 = vpack.c.bf16 %v906_v43, %v905_v32  ;;  %v5713_v43 = vld [vmem:[#allocation2 + $0x15a] sm:$0xff] }
  0xb5   : > { %4117 = vmatprep.mubr.f32.mxu0 %v5635_v28  ;;  %4603 = vmatpush3.bf16.msra.mxu0 %v4600_v42  ;;  %v5701_v42 = vld [vmem:[#allocation2 + $0x142] sm:$0xff] }
  0xb6   : > { %4605 = vmatprep.subr.bf16.mxu0 %v4604_v44  ;;  %v5710_v32 = vld [vmem:[#allocation2 + $0x80] sm:$0xff] }
  0xb7   : > { %3742 = vmatmul.mubr.f32.gmra.mrb[30].mxu1 %v5542_v55  ;;  %v907_v55 = vld [vmem:[#allocation6 + $0x120] sm:$0xff]  ;;  %6117 = vst [vmem:[#allocation22_spill] sm:$0xff] %v5710_v32 }
  0xb8   : > { %4118 = vmatmul.mubr.f32.gmra.mrb[14].mxu0 %v5641_v37  ;;  %3776 = vmatprep.mubr.f32.mxu1 %v5149_v0 }
  0xb9   : > { %4120 = vmatprep.mubr.f32.mxu0 %v5643_v40  ;;  %4607 = vmatpush3.bf16.msra.mxu0 %v4604_v44  ;;  %v4468_v44 = vpack.c.bf16 %v914_v15, %v913_v41  ;;  %v1209_v41 = vld [vmem:[#allocation6 + $0x180] sm:$0xff]  ;;  %v1210_v15 = vld [vmem:[#allocation6 + $0x188] sm:$0xff] }
  0xba   : > { %4609 = vmatprep.subr.bf16.mxu0 %v5645_v48 }
  0xbb   : > { %3777 = vmatmul.mubr.f32.vlgmr.msra.gmra.mrb[0].mxu1 %v5149_v0  ;;  %v4456_v0 = vpack.c.bf16 %v908_v46, %v907_v55  ;;  %v5717_v55 = vld [vmem:[#allocation2 + $0x16a] sm:$0xff]  ;;  %v4472_v46 = vpack.c.bf16 %v916_v29, %v915_v27 }
  0xbc   : > { %4121 = vmatmul.mubr.f32.gmra.mrb[16].mxu0 %v5651_v47  ;;  %4451 = vmatpush3.bf16.msra.mxu1 %v5579_v58  ;;  %v5674_v58 = vld [vmem:[#allocation2 + $0x38] sm:$0xff]  ;;  %v5732_v27 = vld [vmem:[#allocation2 + $0xb0] sm:$0xff] }
  0xbd   : > { %3779 = vmatprep.mubr.f32.mxu1 %v5653_v36  ;;  %4123 = vmatprep.mubr.f32.mxu0 %v5655_v51  ;;  %6121 = vst [vmem:[#allocation26_spill] sm:$0xff] %v5732_v27  ;;  %v1819_v29 = vld [vmem:[#allocation2 + $0x18a] sm:$0xff] }
  0xbe   : > { %4453 = vmatprep.subr.bf16.mxu1 %v4452_v39 }
  0xbf   : > { %3780 = vmatmul.mubr.f32.gmra.mrb[2].mxu1 %v5661_v49 }
  0xc0   : > { %4124 = vmatmul.mubr.f32.gmra.mrb[18].mxu0 %v5665_v52  ;;  %3782 = vmatprep.mubr.f32.mxu1 %v5667_v54 }
  0xc1   : > { %4126 = vmatprep.mubr.f32.mxu0 %v5669_v53  ;;  %4455 = vmatpush3.bf16.msra.mxu1 %v4452_v39  ;;  %v5715_v39 = vld [vmem:[#allocation2 + $0x90] sm:$0xff] }
  0xc2   : > { %4457 = vmatprep.subr.bf16.mxu1 %v4456_v0  ;;  %6118 = vst [vmem:[#allocation23_spill] sm:$0xff] %v5715_v39 }
  0xc3   : > { %3783 = vmatmul.mubr.f32.gmra.mrb[4].mxu1 %v5674_v58 }
  0xc4   : > { %4127 = vmatmul.mubr.f32.gmra.mrb[20].mxu0 %v5677_v60  ;;  %3785 = vmatprep.mubr.f32.mxu1 %v5679_v61 }
  0xc5   : > { %4129 = vmatprep.mubr.f32.mxu0 %v5681_v33  ;;  %4459 = vmatpush3.bf16.msra.mxu1 %v4456_v0  ;;  %v917_v0 = vld [vmem:[#allocation6 + $0x170] sm:$0xff] }
  0xc6   : > { %4461 = vmatprep.subr.bf16.mxu1 %v4460_v63 }
  0xc7   : > { %3786 = vmatmul.mubr.f32.gmra.mrb[6].mxu1 %v5686_v34 }
  0xc8   : > { %4130 = vmatmul.mubr.f32.gmra.mrb[22].mxu0 %v5689_v7  ;;  %3788 = vmatprep.mubr.f32.mxu1 %v5691_v12 }
  0xc9   : > { %4132 = vmatprep.mubr.f32.mxu0 %v5693_v38  ;;  %4463 = vmatpush3.bf16.msra.mxu1 %v4460_v63  ;;  %v5725_v63 = vld [vmem:[#allocation2 + $0x172] sm:$0xff] }
  0xca   : > { %4465 = vmatprep.subr.bf16.mxu1 %v4464_v14 }
  0xcb   : > { %3789 = vmatmul.mubr.f32.gmra.mrb[8].mxu1 %v5698_v16 }
  0xcc   : > { %4133 = vmatmul.mubr.f32.gmra.mrb[24].mxu0 %v5701_v42  ;;  %3791 = vmatprep.mubr.f32.mxu1 %v5703_v19 }
  0xcd   : > { %4135 = vmatprep.mubr.f32.mxu0 %v5705_v20  ;;  %4467 = vmatpush3.bf16.msra.mxu1 %v4464_v14  ;;  %v4476_v14 = vpack.c.bf16 %v918_v30, %v917_v0  ;;  %v2436_v0 = vld [vmem:[#allocation6 + $0x390] sm:$0xff]  ;;  %v2437_v30 = vld [vmem:[#allocation6 + $0x398] sm:$0xff] }
  0xce   : > { %4469 = vmatprep.subr.bf16.mxu1 %v4468_v44 }
  0xcf   : > { %3792 = vmatmul.mubr.f32.gmra.mrb[10].mxu1 %v5710_v32 }
  0xd0   : > { %4136 = vmatmul.mubr.f32.gmra.mrb[26].mxu0 %v5713_v43  ;;  %3794 = vmatprep.mubr.f32.mxu1 %v5715_v39 }
  0xd1   : > { %4138 = vmatprep.mubr.f32.mxu0 %v5717_v55  ;;  %4471 = vmatpush3.bf16.msra.mxu1 %v4468_v44  ;;  %v5736_v44 = vpack.c.bf16 %v1210_v15, %v1209_v41  ;;  %v2439_v41 = vld [vmem:[#allocation6 + $0x3a8] sm:$0xff]  ;;  %v5749_v15 = vld [vmem:[#allocation2 + $0xe0] sm:$0xff] }
  0xd2   : > { %4473 = vmatprep.subr.bf16.mxu1 %v4472_v46 }
  0xd3   : > { %3795 = vmatmul.mubr.f32.gmra.mrb[12].mxu1 %v5722_v59 }
  0xd4   : > { %4139 = vmatmul.mubr.f32.gmra.mrb[28].mxu0 %v5725_v63  ;;  %3797 = vmatprep.mubr.f32.mxu1 %v5727_v3 }
  0xd5   : > { %4141 = vmatprep.mubr.f32.mxu0 %v1818_v6  ;;  %4475 = vmatpush3.bf16.msra.mxu1 %v4472_v46  ;;  %v4612_v6 = vpack.c.bf16 %v2437_v30, %v2436_v0  ;;  %v2438_v46 = vld [vmem:[#allocation6 + $0x3a0] sm:$0xff]  ;;  %v2440_v0 = vld [vmem:[#allocation6 + $0x3b0] sm:$0xff]  ;;  %v2441_v30 = vld [vmem:[#allocation6 + $0x3b8] sm:$0xff] }
  0xd6   : > { %4477 = vmatprep.subr.bf16.mxu1 %v4476_v14  ;;  %v4620_v45 = vpack.c.bf16 %v2441_v30, %v2440_v0  ;;  %v2444_v0 = vld [vmem:[#allocation6 + $0x3d0] sm:$0xff]  ;;  %v2445_v30 = vld [vmem:[#allocation6 + $0x3d8] sm:$0xff] }
  0xd7   : > { %3798 = vmatmul.mubr.f32.gmra.mrb[14].mxu1 %v5732_v27 }
  0xd8   : > { %4142 = vmatmul.mubr.f32.gmra.mrb[30].mxu0 %v1819_v29  ;;  %3800 = vmatprep.mubr.f32.mxu1 %v5734_v2  ;;  %v5753_v29 = vld [vmem:[#allocation2 + $0xf0] sm:$0xff] }
  0xd9   : > { %4176 = vmatprep.mubr.f32.mxu0 %v5667_v54  ;;  %4479 = vmatpush3.bf16.msra.mxu1 %v4476_v14  ;;  %v4616_v14 = vpack.c.bf16 %v2439_v41, %v2438_v46  ;;  %v2442_v46 = vld [vmem:[#allocation6 + $0x3c0] sm:$0xff]  ;;  %v2443_v41 = vld [vmem:[#allocation6 + $0x3c8] sm:$0xff] }
  0xda   : > { %4481 = vmatprep.subr.bf16.mxu1 %v5736_v44 }
  0xdb   : > { %3801 = vmatmul.mubr.f32.gmra.mrb[16].mxu1 %v5740_v26 }
  0xdc   : > { %4177 = vmatmul.mubr.f32.vlgmr.msra.gmra.mrb[0].mxu0 %v5674_v58  ;;  %3803 = vmatprep.mubr.f32.mxu1 %v5743_v57 }
  0xdd   : > { %4611 = vmatpush3.bf16.msra.mxu0 %v5645_v48  ;;  %4179 = vmatprep.mubr.f32.mxu0 %v5679_v61  ;;  %v5761_v48 = vld [vmem:[#allocation2 + $0x108] sm:$0xff] }
  0xde   : > { %4613 = vmatprep.subr.bf16.mxu0 %v4612_v6 }
  0xdf   : > { %3804 = vmatmul.mubr.f32.gmra.mrb[18].mxu1 %v5749_v15 }
  0xe0   : > { %4180 = vmatmul.mubr.f32.gmra.mrb[2].mxu0 %v5686_v34  ;;  %3806 = vmatprep.mubr.f32.mxu1 %v5753_v29 }
  0xe1   : > { %4182 = vmatprep.mubr.f32.mxu0 %v5691_v12  ;;  %4615 = vmatpush3.bf16.msra.mxu0 %v4612_v6  ;;  %v4624_v6 = vpack.c.bf16 %v2443_v41, %v2442_v46  ;;  %v5777_v12 = vld [vmem:[#allocation2 + $0x138] sm:$0xff]  ;;  %v5782_v41 = vld [vmem:[#allocation2 + $0x140] sm:$0xff] }
  0xe2   : > { %4617 = vmatprep.subr.bf16.mxu0 %v4616_v14  ;;  %v2447_v46 = vld [vmem:[#allocation6 + $0x3e8] sm:$0xff] }
  0xe3   : > { %3807 = vmatmul.mubr.f32.gmra.mrb[20].mxu1 %v5758_v22 }
  0xe4   : > { %4183 = vmatmul.mubr.f32.gmra.mrb[4].mxu0 %v5698_v16  ;;  %3809 = vmatprep.mubr.f32.mxu1 %v5761_v48  ;;  %v5774_v16 = vld [vmem:[#allocation2 + $0x128] sm:$0xff] }
  0xe5   : > { %4185 = vmatprep.mubr.f32.mxu0 %v5703_v19  ;;  %4619 = vmatpush3.bf16.msra.mxu0 %v4616_v14  ;;  %v4628_v19 = vpack.c.bf16 %v2445_v30, %v2444_v0  ;;  %v2446_v14 = vld [vmem:[#allocation6 + $0x3e0] sm:$0xff]  ;;  %v2449_v0 = vld [vmem:[#allocation6 + $0x3f8] sm:$0xff]  ;;  %v5790_v30 = vld [vmem:[#allocation2 + $0x158] sm:$0xff] }
  0xe6   : > { %4621 = vmatprep.subr.bf16.mxu0 %v4620_v45 }
  0xe7   : > { %3810 = vmatmul.mubr.f32.gmra.mrb[22].mxu1 %v5766_v35 }
  0xe8   : > { %4186 = vmatmul.mubr.f32.gmra.mrb[6].mxu0 %v5710_v32  ;;  %3812 = vmatprep.mubr.f32.mxu1 %v5769_v24  ;;  %v5785_v32 = vld [vmem:[#allocation2 + $0x150] sm:$0xff] }
  0xe9   : > { %4188 = vmatprep.mubr.f32.mxu0 %v5715_v39  ;;  %4623 = vmatpush3.bf16.msra.mxu0 %v4620_v45  ;;  %v4632_v39 = vpack.c.bf16 %v2447_v46, %v2446_v14  ;;  %v2448_v45 = vld [vmem:[#allocation6 + $0x3f0] sm:$0xff]  ;;  %v2741_v14 = vld [vmem:[#allocation6 + $0x408] sm:$0xff]  ;;  %v5798_v46 = vld [vmem:[#allocation2 + $0x170] sm:$0xff] }
  0xea   : > { %4625 = vmatprep.subr.bf16.mxu0 %v4624_v6 }
  0xeb   : > { %3813 = vmatmul.mubr.f32.gmra.mrb[24].mxu1 %v5774_v16 }
  0xec   : > { %4189 = vmatmul.mubr.f32.gmra.mrb[8].mxu0 %v5722_v59  ;;  %3815 = vmatprep.mubr.f32.mxu1 %v5777_v12  ;;  %v5793_v59 = vld [vmem:[#allocation2 + $0x168] sm:$0xff] }
  0xed   : > { %4191 = vmatprep.mubr.f32.mxu0 %v5727_v3  ;;  %4627 = vmatpush3.bf16.msra.mxu0 %v4624_v6  ;;  %v4636_v3 = vpack.c.bf16 %v2449_v0, %v2448_v45  ;;  %v2740_v6 = vld [vmem:[#allocation6 + $0x400] sm:$0xff]  ;;  %v1212_v45 = vld [vmem:[#allocation6 + $0x198] sm:$0xff] }
  0xee   : > { %4629 = vmatprep.subr.bf16.mxu0 %v4628_v19  ;;  %v871_v0 = vld [vmem:[#allocation2 + $0xa] sm:$0xff] }
  0xef   : > { %3816 = vmatmul.mubr.f32.gmra.mrb[26].mxu1 %v5782_v41 }
  0xf0   : > { %4192 = vmatmul.mubr.f32.gmra.mrb[10].mxu0 %v5732_v27  ;;  %3818 = vmatprep.mubr.f32.mxu1 %v5785_v32  ;;  %v870_v27 = vld [vmem:[#allocation2 + $0x2] sm:$0xff] }
  0xf1   : > { %4194 = vmatprep.mubr.f32.mxu0 %v5734_v2  ;;  %4631 = vmatpush3.bf16.msra.mxu0 %v4628_v19  ;;  %v5801_v2 = vpack.c.bf16 %v2741_v14, %v2740_v6  ;;  %v1211_v19 = vld [vmem:[#allocation6 + $0x190] sm:$0xff] }
  0xf2   : > { %4633 = vmatprep.subr.bf16.mxu0 %v4632_v39  ;;  %v1215_v6 = vld [vmem:[#allocation6 + $0x1b0] sm:$0xff] }
  0xf3   : > { %3819 = vmatmul.mubr.f32.gmra.mrb[28].mxu1 %v5790_v30 }
  0xf4   : > { %4195 = vmatmul.mubr.f32.gmra.mrb[12].mxu0 %v5740_v26  ;;  %3821 = vmatprep.mubr.f32.mxu1 %v5793_v59  ;;  %v4484_v26 = vpack.c.bf16 %v1212_v45, %v1211_v19  ;;  %v1223_v19 = vld [vmem:[#allocation6 + $0x1f0] sm:$0xff]  ;;  %v1224_v45 = vld [vmem:[#allocation6 + $0x1f8] sm:$0xff] }
  0xf5   : > { %4197 = vmatprep.mubr.f32.mxu0 %v5743_v57  ;;  %4635 = vmatpush3.bf16.msra.mxu0 %v4632_v39  ;;  %v1213_v57 = vld [vmem:[#allocation6 + $0x1a0] sm:$0xff]  ;;  %v1214_v39 = vld [vmem:[#allocation6 + $0x1a8] sm:$0xff] }
  0xf6   : > { %4637 = vmatprep.subr.bf16.mxu0 %v4636_v3 }
  0xf7   : > { %3822 = vmatmul.mubr.f32.gmra.mrb[30].mxu1 %v5798_v46 }
  0xf8   : > { %4198 = vmatmul.mubr.f32.gmra.mrb[14].mxu0 %v5749_v15  ;;  %3856 = vmatprep.mubr.f32.mxu1 %v870_v27  ;;  %v4488_v27 = vpack.c.bf16 %v1214_v39, %v1213_v57  ;;  %v2743_v39 = vld [vmem:[#allocation6 + $0x418] sm:$0xff] }
  0xf9   : > { %4200 = vmatprep.mubr.f32.mxu0 %v5753_v29  ;;  %4639 = vmatpush3.bf16.msra.mxu0 %v4636_v3  ;;  %v1216_v3 = vld [vmem:[#allocation6 + $0x1b8] sm:$0xff] }
  0xfa   : > { %4641 = vmatprep.subr.bf16.mxu0 %v5801_v2  ;;  %v4492_v14 = vpack.c.bf16 %v1216_v3, %v1215_v6  ;;  %v2745_v3 = vld [vmem:[#allocation6 + $0x428] sm:$0xff] }
  0xfb   : > { %3857 = vmatmul.mubr.f32.vlgmr.msra.gmra.mrb[0].mxu1 %v871_v0  ;;  %v2401_v0 = vld [vmem:[#allocation2 + $0x31] sm:$0xff] }
  0xfc   : > { %4201 = vmatmul.mubr.f32.gmra.mrb[16].mxu0 %v5758_v22  ;;  %4483 = vmatpush3.bf16.msra.mxu1 %v5736_v44  ;;  %v1218_v44 = vld [vmem:[#allocation6 + $0x1c8] sm:$0xff] }
  0xfd   : > { %3859 = vmatprep.mubr.f32.mxu1 %v5576_v50  ;;  %4203 = vmatprep.mubr.f32.mxu0 %v5761_v48  ;;  %v1217_v50 = vld [vmem:[#allocation6 + $0x1c0] sm:$0xff] }
  0xfe   : > { %4485 = vmatprep.subr.bf16.mxu1 %v4484_v26  ;;  %v4496_v57 = vpack.c.bf16 %v1218_v44, %v1217_v50  ;;  %v2746_v50 = vld [vmem:[#allocation6 + $0x430] sm:$0xff]  ;;  %v2747_v44 = vld [vmem:[#allocation6 + $0x438] sm:$0xff] }
  0xff   : > { %3860 = vmatmul.mubr.f32.gmra.mrb[2].mxu1 %v5584_v56  ;;  %v1219_v56 = vld [vmem:[#allocation6 + $0x1d0] sm:$0xff] }
 0x100   : > { %4204 = vmatmul.mubr.f32.gmra.mrb[18].mxu0 %v5766_v35  ;;  %3862 = vmatprep.mubr.f32.mxu1 %v5586_v31  ;;  %v1220_v31 = vld [vmem:[#allocation6 + $0x1d8] sm:$0xff] }
 0x101   : > { %4206 = vmatprep.mubr.f32.mxu0 %v5769_v24  ;;  %4487 = vmatpush3.bf16.msra.mxu1 %v4484_v26  ;;  %v4500_v26 = vpack.c.bf16 %v1220_v31, %v1219_v56  ;;  %v2749_v56 = vld [vmem:[#allocation6 + $0x448] sm:$0xff] }
 0x102   : > { %4489 = vmatprep.subr.bf16.mxu1 %v4488_v27  ;;  %v2409_v31 = vld [vmem:[#allocation2 + $0x91] sm:$0xff] }
 0x103   : > { %3863 = vmatmul.mubr.f32.gmra.mrb[4].mxu1 %v5593_v62  ;;  %v1221_v62 = vld [vmem:[#allocation6 + $0x1e0] sm:$0xff] }
 0x104   : > { %4207 = vmatmul.mubr.f32.gmra.mrb[20].mxu0 %v5774_v16  ;;  %3865 = vmatprep.mubr.f32.mxu1 %v5595_v1  ;;  %v1222_v1 = vld [vmem:[#allocation6 + $0x1e8] sm:$0xff] }
 0x105   : > { %4209 = vmatprep.mubr.f32.mxu0 %v5777_v12  ;;  %4491 = vmatpush3.bf16.msra.mxu1 %v4488_v27  ;;  %v2402_v27 = vld [vmem:[#allocation2 + $0x39] sm:$0xff] }
 0x106   : > { %4493 = vmatprep.subr.bf16.mxu1 %v4492_v14 }
 0x107   : > { %3866 = vmatmul.mubr.f32.gmra.mrb[6].mxu1 %v5601_v5  ;;  %v5827_v5 = vld [vmem:[#allocation2 + $0x180] sm:$0xff] }
 0x108   : > { %4210 = vmatmul.mubr.f32.gmra.mrb[22].mxu0 %v5782_v41  ;;  %3868 = vmatprep.mubr.f32.mxu1 %v5603_v4  ;;  %v4504_v4 = vpack.c.bf16 %v1222_v1, %v1221_v62  ;;  %v2751_v62 = vld [vmem:[#allocation6 + $0x458] sm:$0xff] }
 0x109   : > { %4212 = vmatprep.mubr.f32.mxu0 %v5785_v32  ;;  %4495 = vmatpush3.bf16.msra.mxu1 %v4492_v14  ;;  %v2405_v14 = vld [vmem:[#allocation2 + $0x61] sm:$0xff]  ;;  %v2411_v1 = vld [vmem:[#allocation2 + $0xa9] sm:$0xff] }
 0x10a   : > { %4497 = vmatprep.subr.bf16.mxu1 %v4496_v57 }
 0x10b   : > { %3869 = vmatmul.mubr.f32.gmra.mrb[8].mxu1 %v5609_v9  ;;  %v5833_v9 = vld [vmem:[#allocation2 + $0x188] sm:$0xff] }
 0x10c   : > { %4213 = vmatmul.mubr.f32.gmra.mrb[24].mxu0 %v5790_v30  ;;  %3871 = vmatprep.mubr.f32.mxu1 %v5611_v10  ;;  %v4508_v10 = vpack.c.bf16 %v1224_v45, %v1223_v19  ;;  %v2753_v19 = vld [vmem:[#allocation6 + $0x468] sm:$0xff]  ;;  %v2413_v45 = vld [vmem:[#allocation2 + $0xc1] sm:$0xff] }
 0x10d   : > { %4215 = vmatprep.mubr.f32.mxu0 %v5793_v59  ;;  %4499 = vmatpush3.bf16.msra.mxu1 %v4496_v57  ;;  %v2407_v57 = vld [vmem:[#allocation2 + $0x79] sm:$0xff] }
 0x10e   : > { %4501 = vmatprep.subr.bf16.mxu1 %v4500_v26 }
 0x10f   : > { %3872 = vmatmul.mubr.f32.gmra.mrb[10].mxu1 %v5617_v11  ;;  %v5006_v11 = vld [vmem:[#allocation2] sm:$0xff] }
 0x110   : > { %4216 = vmatmul.mubr.f32.gmra.mrb[26].mxu0 %v5798_v46  ;;  %3874 = vmatprep.mubr.f32.mxu1 %v5619_v17  ;;  %v2742_v17 = vld [vmem:[#allocation6 + $0x410] sm:$0xff] }
 0x111   : > { %4218 = vmatprep.mubr.f32.mxu0 %v5827_v5  ;;  %4503 = vmatpush3.bf16.msra.mxu1 %v4500_v26  ;;  %v4644_v6 = vpack.c.bf16 %v2743_v39, %v2742_v17  ;;  %v5861_v17 = vld [vmem:[#allocation2 + $0xf1] sm:$0xff] }
 0x112   : > { %4505 = vmatprep.subr.bf16.mxu1 %v4504_v4  ;;  %v6128_v39 = vld [vmem:[#allocation21_spill] sm:$0xff] }
 0x113   : > { %3875 = vmatmul.mubr.f32.gmra.mrb[12].mxu1 %v5625_v21  ;;  %v2403_v21 = vld [vmem:[#allocation2 + $0x49] sm:$0xff] }
 0x114   : > { %4219 = vmatmul.mubr.f32.gmra.mrb[28].mxu0 %v5833_v9  ;;  %3877 = vmatprep.mubr.f32.mxu1 %v5627_v23  ;;  %v2744_v23 = vld [vmem:[#allocation6 + $0x420] sm:$0xff] }
 0x115   : > { %4221 = vmatprep.mubr.f32.mxu0 %v5006_v11  ;;  %4507 = vmatpush3.bf16.msra.mxu1 %v4504_v4 }
 0x116   : > { %4509 = vmatprep.subr.bf16.mxu1 %v4508_v10 }
 0x117   : > { %3878 = vmatmul.mubr.f32.gmra.mrb[14].mxu1 %v5633_v25  ;;  %v2404_v25 = vld [vmem:[#allocation2 + $0x51] sm:$0xff] }
 0x118   : > { %4222 = vmatmul.mubr.f32.gmra.mrb[30].mxu0 %v5006_v11  ;;  %3880 = vmatprep.mubr.f32.mxu1 %v5635_v28  ;;  %v4648_v28 = vpack.c.bf16 %v2745_v3, %v2744_v23  ;;  %v2755_v11 = vld [vmem:[#allocation6 + $0x478] sm:$0xff]  ;;  %v6132_v23 = vld [vmem:[#allocation14_spill] sm:$0xff]  ;;  %v6133_v3 = vld [vmem:[#allocation24_spill] sm:$0xff] }
 0x119   : > { %4256 = vmatprep.mubr.f32.mxu0 %v2401_v0  ;;  %4511 = vmatpush3.bf16.msra.mxu1 %v4508_v10  ;;  %v5854_v0 = vld [vmem:[#allocation2 + $0xd9] sm:$0xff] }
 0x11a   : > { %4672 = vmatprep.subr.bf16.mxu1 %v5388_v8 }
 0x11b   : > { %3881 = vmatmul.mubr.f32.gmra.mrb[16].mxu1 %v5641_v37  ;;  %v2406_v37 = vld [vmem:[#allocation2 + $0x69] sm:$0xff] }
 0x11c   : > { %4257 = vmatmul.mubr.f32.vlgmr.msra.gmra.mrb[0].mxu0 %v2402_v27  ;;  %3883 = vmatprep.mubr.f32.mxu1 %v5643_v40  ;;  %v4652_v40 = vpack.c.bf16 %v2747_v44, %v2746_v50  ;;  %v6130_v27 = vld [vmem:[#allocation22_spill] sm:$0xff]  ;;  %v6136_v44 = vld [vmem:[#allocation15_spill] sm:$0xff] }
 0x11d   : > { %4643 = vmatpush3.bf16.msra.mxu0 %v5801_v2  ;;  %4259 = vmatprep.mubr.f32.mxu0 %v2403_v21  ;;  %v2748_v2 = vld [vmem:[#allocation6 + $0x440] sm:$0xff]  ;;  %v5012_v21 = vld [vmem:[#allocation2 + $0x159] sm:$0xff] }
 0x11e   : > { %4645 = vmatprep.subr.bf16.mxu0 %v4644_v6  ;;  %v4656_v26 = vpack.c.bf16 %v2749_v56, %v2748_v2  ;;  %v2431_v50 = vld [vmem:[#allocation2 + $0x199] sm:$0xff]  ;;  %v2432_v2 = vld [vmem:[#allocation2 + $0x1a1] sm:$0xff] }
 0x11f   : > { %3884 = vmatmul.mubr.f32.gmra.mrb[18].mxu1 %v5651_v47  ;;  %v2408_v47 = vld [vmem:[#allocation2 + $0x81] sm:$0xff]  ;;  %v2707_v56 = vld [vmem:[#allocation2 + $0x32] sm:$0xff] }
 0x120   : > { %4260 = vmatmul.mubr.f32.gmra.mrb[2].mxu0 %v2404_v25  ;;  %3886 = vmatprep.mubr.f32.mxu1 %v5655_v51  ;;  %v2750_v51 = vld [vmem:[#allocation6 + $0x450] sm:$0xff]  ;;  %v5014_v25 = vld [vmem:[#allocation2 + $0x171] sm:$0xff] }
 0x121   : > { %4262 = vmatprep.mubr.f32.mxu0 %v2405_v14  ;;  %4647 = vmatpush3.bf16.msra.mxu0 %v4644_v6  ;;  %v4660_v4 = vpack.c.bf16 %v2751_v62, %v2750_v51  ;;  %v6131_v6 = vld [vmem:[#allocation23_spill] sm:$0xff]  ;;  %v6134_v14 = vld [vmem:[#allocation25_spill] sm:$0xff] }
 0x122   : > { %4649 = vmatprep.subr.bf16.mxu0 %v4648_v28  ;;  %v2708_v51 = vld [vmem:[#allocation2 + $0x3a] sm:$0xff]  ;;  %v2709_v62 = vld [vmem:[#allocation2 + $0x4a] sm:$0xff] }
 0x123   : > { %3887 = vmatmul.mubr.f32.gmra.mrb[20].mxu1 %v5665_v52  ;;  %v2410_v52 = vld [vmem:[#allocation2 + $0x99] sm:$0xff] }
 0x124   : > { %4263 = vmatmul.mubr.f32.gmra.mrb[4].mxu0 %v2406_v37  ;;  %3889 = vmatprep.mubr.f32.mxu1 %v5669_v53  ;;  %v2752_v53 = vld [vmem:[#allocation6 + $0x460] sm:$0xff]  ;;  %v6137_v37 = vld [vmem:[#allocation26_spill] sm:$0xff] }
 0x125   : > { %4265 = vmatprep.mubr.f32.mxu0 %v2407_v57  ;;  %4651 = vmatpush3.bf16.msra.mxu0 %v4648_v28  ;;  %v4664_v10 = vpack.c.bf16 %v2753_v19, %v2752_v53  ;;  %v6135_v28 = vld [vmem:[#allocation17_spill] sm:$0xff]  ;;  %v6138_v57 = vld [vmem:[#allocation18_spill] sm:$0xff] }
 0x126   : > { %4653 = vmatprep.subr.bf16.mxu0 %v4652_v40  ;;  %v2713_v53 = vld [vmem:[#allocation2 + $0x7a] sm:$0xff]  ;;  %v2715_v19 = vld [vmem:[#allocation2 + $0x92] sm:$0xff] }
 0x127   : > { %3890 = vmatmul.mubr.f32.gmra.mrb[22].mxu1 %v5677_v60  ;;  %v2412_v60 = vld [vmem:[#allocation2 + $0xb1] sm:$0xff] }
 0x128   : > { %4266 = vmatmul.mubr.f32.gmra.mrb[6].mxu0 %v2408_v47  ;;  %3892 = vmatprep.mubr.f32.mxu1 %v5681_v33  ;;  %v2754_v33 = vld [vmem:[#allocation6 + $0x470] sm:$0xff]  ;;  %v6140_v47 = vld [vmem:[#allocation16_spill] sm:$0xff] }
 0x129   : > { %4268 = vmatprep.mubr.f32.mxu0 %v2409_v31  ;;  %4655 = vmatpush3.bf16.msra.mxu0 %v4652_v40  ;;  %v6139_v40 = vld [vmem:[#allocation27_spill] sm:$0xff]  ;;  %v6141_v31 = vld [vmem:[#allocation28_spill] sm:$0xff] }
 0x12a   : > { %4657 = vmatprep.subr.bf16.mxu0 %v4656_v26 }
 0x12b   : > { %3893 = vmatmul.mubr.f32.gmra.mrb[24].mxu1 %v5689_v7  ;;  %v2414_v7 = vld [vmem:[#allocation2 + $0xc9] sm:$0xff] }
 0x12c   : > { %4269 = vmatmul.mubr.f32.gmra.mrb[8].mxu0 %v2410_v52  ;;  %3895 = vmatprep.mubr.f32.mxu1 %v5693_v38  ;;  %v4668_v38 = vpack.c.bf16 %v2755_v11, %v2754_v33  ;;  %v2710_v52 = vld [vmem:[#allocation2 + $0x52] sm:$0xff] }
 0x12d   : > { %4271 = vmatprep.mubr.f32.mxu0 %v2411_v1  ;;  %4659 = vmatpush3.bf16.msra.mxu0 %v4656_v26  ;;  %v6142_v26 = vld [vmem:[#allocation29_spill] sm:$0xff]  ;;  %v2711_v1 = vld [vmem:[#allocation2 + $0x62] sm:$0xff] }
 0x12e   : > { %4661 = vmatprep.subr.bf16.mxu0 %v4660_v4  ;;  %v1506_v33 = vld [vmem:[#allocation2 + $0x139] sm:$0xff] }
 0x12f   : > { %3896 = vmatmul.mubr.f32.gmra.mrb[26].mxu1 %v5701_v42  ;;  %v5859_v42 = vld [vmem:[#allocation2 + $0xe1] sm:$0xff]  ;;  %v2731_v11 = vld [vmem:[#allocation2 + $0x152] sm:$0xff] }
 0x130   : > { %4272 = vmatmul.mubr.f32.gmra.mrb[10].mxu0 %v2412_v60  ;;  %3898 = vmatprep.mubr.f32.mxu1 %v5705_v20  ;;  %v5867_v20 = vld [vmem:[#allocation2 + $0xf9] sm:$0xff] }
 0x131   : > { %4274 = vmatprep.mubr.f32.mxu0 %v2413_v45  ;;  %4663 = vmatpush3.bf16.msra.mxu0 %v4660_v4  ;;  %v2712_v4 = vld [vmem:[#allocation2 + $0x6a] sm:$0xff]  ;;  %v2729_v60 = vld [vmem:[#allocation2 + $0x13a] sm:$0xff] }
 0x132   : > { %4665 = vmatprep.subr.bf16.mxu0 %v4664_v10  ;;  %v1505_v45 = vld [vmem:[#allocation2 + $0x129] sm:$0xff] }
 0x133   : > { %3899 = vmatmul.mubr.f32.gmra.mrb[28].mxu1 %v5713_v43  ;;  %v5869_v43 = vld [vmem:[#allocation2 + $0x109] sm:$0xff] }
 0x134   : > { %4275 = vmatmul.mubr.f32.gmra.mrb[12].mxu0 %v2414_v7  ;;  %3901 = vmatprep.mubr.f32.mxu1 %v5717_v55  ;;  %v5876_v55 = vld [vmem:[#allocation2 + $0x111] sm:$0xff]  ;;  %v1507_v7 = vld [vmem:[#allocation2 + $0x141] sm:$0xff] }
 0x135   : > { %4277 = vmatprep.mubr.f32.mxu0 %v5854_v0  ;;  %4667 = vmatpush3.bf16.msra.mxu0 %v4664_v10  ;;  %v2730_v10 = vld [vmem:[#allocation2 + $0x142] sm:$0xff] }
 0x136   : > { %4669 = vmatprep.subr.bf16.mxu0 %v4668_v38 }
 0x137   : > { %3902 = vmatmul.mubr.f32.gmra.mrb[30].mxu1 %v5725_v63  ;;  %v6127_v63 = vld [vmem:[#allocation20_spill] sm:$0xff] }
 0x138   : > { %4278 = vmatmul.mubr.f32.gmra.mrb[14].mxu0 %v5859_v42  ;;  %3936 = vmatprep.mubr.f32.mxu1 %v5653_v36  ;;  %v5007_v36 = vld [vmem:[#allocation2 + $0x121] sm:$0xff] }
 0x139   : > { %4280 = vmatprep.mubr.f32.mxu0 %v5861_v17  ;;  %4671 = vmatpush3.bf16.msra.mxu0 %v4668_v38  ;;  %v1508_v38 = vld [vmem:[#allocation2 + $0x151] sm:$0xff] }
 0x13b   : > { %3937 = vmatmul.mubr.f32.vlgmr.msra.gmra.mrb[0].mxu1 %v5661_v49  ;;  %v6125_v49 = vld [vmem:[#allocation19_spill] sm:$0xff] }
 0x13c   : > { %4281 = vmatmul.mubr.f32.gmra.mrb[16].mxu0 %v5867_v20  ;;  %4680 = vmatpush3.bf16.msra.mxu1 %v5388_v8  ;;  %v5008_v8 = vld [vmem:[#allocation2 + $0x129] sm:$0xff] }
 0x13d   : > { %3939 = vmatprep.mubr.f32.mxu1 %v5667_v54  ;;  %4283 = vmatprep.mubr.f32.mxu0 %v5869_v43  ;;  %v5009_v54 = vld [vmem:[#allocation2 + $0x139] sm:$0xff] }
 0x13e   : > { %4673 = vmatprep.subr.bf16.mxu1 %v5390_v13 }
 0x13f   : > { %3940 = vmatmul.mubr.f32.gmra.mrb[2].mxu1 %v5674_v58  ;;  %v6126_v58 = vld [vmem:[#allocation12_spill] sm:$0xff] }
 0x140   : > { %4284 = vmatmul.mubr.f32.gmra.mrb[18].mxu0 %v5876_v55  ;;  %3942 = vmatprep.mubr.f32.mxu1 %v5679_v61  ;;  %v5010_v61 = vld [vmem:[#allocation2 + $0x141] sm:$0xff] }
 0x141   : > { %4286 = vmatprep.mubr.f32.mxu0 %v5007_v36  ;;  %4681 = vmatpush3.bf16.msra.mxu1 %v5390_v13  ;;  %v5011_v13 = vld [vmem:[#allocation2 + $0x151] sm:$0xff] }
 0x142   : > { %4674 = vmatprep.subr.bf16.mxu1 %v5395_v18  ;;  %v1511_v36 = vld [vmem:[#allocation2 + $0x171] sm:$0xff] }
 0x143   : > { %3943 = vmatmul.mubr.f32.gmra.mrb[4].mxu1 %v5686_v34  ;;  %v6129_v34 = vld [vmem:[#allocation13_spill] sm:$0xff] }
 0x144   : > { %4287 = vmatmul.mubr.f32.gmra.mrb[20].mxu0 %v5008_v8  ;;  %3945 = vmatprep.mubr.f32.mxu1 %v6125_v49  ;;  %v2736_v8 = vld [vmem:[#allocation2 + $0x18a] sm:$0xff]  ;;  %v1512_v49 = vld [vmem:[#allocation2 + $0x181] sm:$0xff] }
 0x145   : > { %4289 = vmatprep.mubr.f32.mxu0 %v5009_v54  ;;  %4682 = vmatpush3.bf16.msra.mxu1 %v5395_v18  ;;  %v5013_v18 = vld [vmem:[#allocation2 + $0x169] sm:$0xff]  ;;  %v2737_v54 = vld [vmem:[#allocation2 + $0x19a] sm:$0xff] }
 0x146   : > { %4675 = vmatprep.subr.bf16.mxu1 %v6126_v58 }
 0x147   : > { %3946 = vmatmul.mubr.f32.gmra.mrb[6].mxu1 %v6127_v63  ;;  %v2738_v63 = vld [vmem:[#allocation2 + $0x1a2] sm:$0xff] }
 0x148   : > { %4290 = vmatmul.mubr.f32.gmra.mrb[22].mxu0 %v5010_v61  ;;  %3948 = vmatprep.mubr.f32.mxu1 %v6128_v39 }
 0x149   : > { %4292 = vmatprep.mubr.f32.mxu0 %v5011_v13  ;;  %4683 = vmatpush3.bf16.msra.mxu1 %v6126_v58  ;;  %v1513_v58 = vld [vmem:[#allocation2 + $0x189] sm:$0xff] }
 0x14a   : > { %4676 = vmatprep.subr.bf16.mxu1 %v6129_v34 }
 0x14b   : > { %3949 = vmatmul.mubr.f32.gmra.mrb[8].mxu1 %v6130_v27 }
 0x14c   : > { %4293 = vmatmul.mubr.f32.gmra.mrb[24].mxu0 %v5012_v21  ;;  %3951 = vmatprep.mubr.f32.mxu1 %v6131_v6 }
 0x14d   : > { %4295 = vmatprep.mubr.f32.mxu0 %v5013_v18  ;;  %4684 = vmatpush3.bf16.msra.mxu1 %v6129_v34 }
 0x14e   : > { %4677 = vmatprep.subr.bf16.mxu1 %v6132_v23 }
 0x14f   : > { %3952 = vmatmul.mubr.f32.gmra.mrb[10].mxu1 %v6133_v3 }
 0x150   : > { %4296 = vmatmul.mubr.f32.gmra.mrb[26].mxu0 %v5014_v25  ;;  %3954 = vmatprep.mubr.f32.mxu1 %v6134_v14 }
 0x151   : > { %4298 = vmatprep.mubr.f32.mxu0 %v6135_v28  ;;  %4685 = vmatpush3.bf16.msra.mxu1 %v6132_v23 }
 0x152   : > { %4678 = vmatprep.subr.bf16.mxu1 %v6136_v44 }
 0x153   : > { %3955 = vmatmul.mubr.f32.gmra.mrb[12].mxu1 %v6137_v37 }
 0x154   : > { %4299 = vmatmul.mubr.f32.gmra.mrb[28].mxu0 %v6138_v57  ;;  %3957 = vmatprep.mubr.f32.mxu1 %v6139_v40  ;;  %v5941_v40 = vld [vmem:[%s6068_s2] ss:$0 sm:$0xff] }
 0x155   : > { %4301 = vmatprep.mubr.f32.mxu0 %v2431_v50  ;;  %4686 = vmatpush3.bf16.msra.mxu1 %v6136_v44 }
 0x156   : > { %4679 = vmatprep.subr.bf16.mxu1 %v6140_v47 }
 0x157   : > { %3958 = vmatmul.mubr.f32.gmra.mrb[14].mxu1 %v6141_v31 }
 0x158   : > { %4302 = vmatmul.mubr.f32.gmra.mrb[30].mxu0 %v2432_v2  ;;  %3960 = vmatprep.mubr.f32.mxu1 %v6142_v26 }
 0x159   : > { %4336 = vmatprep.mubr.f32.mxu0 %v2707_v56  ;;  %4687 = vmatpush3.bf16.msra.mxu1 %v6140_v47 }
 0x15b   : > { %3961 = vmatmul.mubr.f32.gmra.mrb[16].mxu1 %v5749_v15  ;;  %v2714_v15 = vld [vmem:[#allocation2 + $0x82] sm:$0xff] }
 0x15c   : > { %4337 = vmatmul.mubr.f32.vlgmr.msra.gmra.mrb[0].mxu0 %v2708_v51  ;;  %3963 = vmatprep.mubr.f32.mxu1 %v5753_v29  ;;  %v2717_v29 = vld [vmem:[#allocation2 + $0xaa] sm:$0xff] }
 0x15d   : > { %4339 = vmatprep.mubr.f32.mxu0 %v2709_v62 }
 0x15f   : > { %3964 = vmatmul.mubr.f32.gmra.mrb[18].mxu1 %v5758_v22  ;;  %v2716_v22 = vld [vmem:[#allocation2 + $0x9a] sm:$0xff] }
 0x160   : > { %4340 = vmatmul.mubr.f32.gmra.mrb[2].mxu0 %v2710_v52  ;;  %3966 = vmatprep.mubr.f32.mxu1 %v5761_v48  ;;  %v2719_v48 = vld [vmem:[#allocation2 + $0xc2] sm:$0xff] }
 0x161   : > { %4342 = vmatprep.mubr.f32.mxu0 %v2711_v1 }
 0x163   : > { %3967 = vmatmul.mubr.f32.gmra.mrb[20].mxu1 %v5766_v35  ;;  %v2718_v35 = vld [vmem:[#allocation2 + $0xb2] sm:$0xff] }
 0x164   : > { %4343 = vmatmul.mubr.f32.gmra.mrb[4].mxu0 %v2712_v4  ;;  %3969 = vmatprep.mubr.f32.mxu1 %v5769_v24  ;;  %v2720_v24 = vld [vmem:[#allocation2 + $0xca] sm:$0xff] }
 0x165   : > { %4345 = vmatprep.mubr.f32.mxu0 %v2713_v53 }
 0x167   : > { %3970 = vmatmul.mubr.f32.gmra.mrb[22].mxu1 %v5774_v16  ;;  %v2721_v16 = vld [vmem:[#allocation2 + $0xda] sm:$0xff] }
 0x168   : > { %4346 = vmatmul.mubr.f32.gmra.mrb[6].mxu0 %v2714_v15  ;;  %3972 = vmatprep.mubr.f32.mxu1 %v5777_v12  ;;  %v2722_v12 = vld [vmem:[#allocation2 + $0xe2] sm:$0xff] }
 0x169   : > { %4348 = vmatprep.mubr.f32.mxu0 %v2715_v19 }
 0x16b   : > { %3973 = vmatmul.mubr.f32.gmra.mrb[24].mxu1 %v5782_v41  ;;  %v2723_v41 = vld [vmem:[#allocation2 + $0xf2] sm:$0xff] }
 0x16c   : > { %4349 = vmatmul.mubr.f32.gmra.mrb[8].mxu0 %v2716_v22  ;;  %3975 = vmatprep.mubr.f32.mxu1 %v5785_v32  ;;  %v2724_v32 = vld [vmem:[#allocation2 + $0xfa] sm:$0xff] }
 0x16d   : > { %4351 = vmatprep.mubr.f32.mxu0 %v2717_v29 }
 0x16f   : > { %3976 = vmatmul.mubr.f32.gmra.mrb[26].mxu1 %v5790_v30  ;;  %v2725_v30 = vld [vmem:[#allocation2 + $0x10a] sm:$0xff] }
 0x170   : > { %4352 = vmatmul.mubr.f32.gmra.mrb[10].mxu0 %v2718_v35  ;;  %3978 = vmatprep.mubr.f32.mxu1 %v5793_v59  ;;  %v2726_v59 = vld [vmem:[#allocation2 + $0x112] sm:$0xff] }
 0x171   : > { %4354 = vmatprep.mubr.f32.mxu0 %v2719_v48 }
 0x173   : > { %3979 = vmatmul.mubr.f32.gmra.mrb[28].mxu1 %v5798_v46  ;;  %v2727_v46 = vld [vmem:[#allocation2 + $0x122] sm:$0xff] }
 0x174   : > { %4355 = vmatmul.mubr.f32.gmra.mrb[12].mxu0 %v2720_v24  ;;  %3981 = vmatprep.mubr.f32.mxu1 %v5827_v5  ;;  %v2728_v5 = vld [vmem:[#allocation2 + $0x12a] sm:$0xff] }
 0x175   : > { %4357 = vmatprep.mubr.f32.mxu0 %v2721_v16 }
 0x177   : > { %3982 = vmatmul.mubr.f32.gmra.mrb[30].mxu1 %v5833_v9  ;;  %v1504_v9 = vld [vmem:[#allocation2 + $0x121] sm:$0xff] }
 0x178   : > { %4358 = vmatmul.mubr.f32.gmra.mrb[14].mxu0 %v2722_v12  ;;  %4040 = vmatprep.mubr.f32.mxu1 %v5854_v0  ;;  %v2732_v0 = vld [vmem:[#allocation2 + $0x15a] sm:$0xff] }
 0x179   : > { %4360 = vmatprep.mubr.f32.mxu0 %v2723_v41 }
 0x17b   : > { %4041 = vmatmul.mubr.f32.vlgmr.msra.gmra.mrb[16].mxu1 %v5859_v42  ;;  %v2733_v42 = vld [vmem:[#allocation2 + $0x16a] sm:$0xff] }
 0x17c   : > { %4361 = vmatmul.mubr.f32.gmra.mrb[16].mxu0 %v2724_v32  ;;  %4043 = vmatprep.mubr.f32.mxu1 %v5861_v17  ;;  %v1509_v17 = vld [vmem:[#allocation2 + $0x159] sm:$0xff] }
 0x17d   : > { %4363 = vmatprep.mubr.f32.mxu0 %v2725_v30 }
 0x17f   : > { %4044 = vmatmul.mubr.f32.gmra.mrb[18].mxu1 %v5867_v20  ;;  %v2734_v20 = vld [vmem:[#allocation2 + $0x172] sm:$0xff] }
 0x180   : > { %4364 = vmatmul.mubr.f32.gmra.mrb[18].mxu0 %v2726_v59  ;;  %4046 = vmatprep.mubr.f32.mxu1 %v5869_v43  ;;  %v1510_v43 = vld [vmem:[#allocation2 + $0x169] sm:$0xff] }
 0x181   : > { %4366 = vmatprep.mubr.f32.mxu0 %v2727_v46 }
 0x183   : > { %4047 = vmatmul.mubr.f32.gmra.mrb[20].mxu1 %v5876_v55  ;;  %v2735_v55 = vld [vmem:[#allocation2 + $0x182] sm:$0xff] }
 0x184   : > { %4367 = vmatmul.mubr.f32.gmra.mrb[20].mxu0 %v2728_v5  ;;  %4049 = vmatprep.mubr.f32.mxu1 %v1504_v9 }
 0x185   : > { %4369 = vmatprep.mubr.f32.mxu0 %v2729_v60 }
 0x187   : > { %4050 = vmatmul.mubr.f32.gmra.mrb[22].mxu1 %v1505_v45 }
 0x188   : > { %4370 = vmatmul.mubr.f32.gmra.mrb[22].mxu0 %v2730_v10  ;;  %4052 = vmatprep.mubr.f32.mxu1 %v1506_v33 }
 0x189   : > { %4372 = vmatprep.mubr.f32.mxu0 %v2731_v11 }
 0x18b   : > { %4053 = vmatmul.mubr.f32.gmra.mrb[24].mxu1 %v1507_v7 }
 0x18c   : > { %4373 = vmatmul.mubr.f32.gmra.mrb[24].mxu0 %v2732_v0  ;;  %4055 = vmatprep.mubr.f32.mxu1 %v1508_v38 }
 0x18d   : > { %4375 = vmatprep.mubr.f32.mxu0 %v2733_v42 }
 0x18f   : > { %4056 = vmatmul.mubr.f32.gmra.mrb[26].mxu1 %v1509_v17 }
 0x190   : > { %4376 = vmatmul.mubr.f32.gmra.mrb[26].mxu0 %v2734_v20  ;;  %4058 = vmatprep.mubr.f32.mxu1 %v1510_v43 }
 0x191   : > { %4378 = vmatprep.mubr.f32.mxu0 %v2735_v55 }
 0x193   : > { %4059 = vmatmul.mubr.f32.gmra.mrb[28].mxu1 %v1511_v36 }
 0x194   : > { %4379 = vmatmul.mubr.f32.gmra.mrb[28].mxu0 %v2736_v8  ;;  %4061 = vmatprep.mubr.f32.mxu1 %v1512_v49 }
 0x195   : > { %4381 = vmatprep.mubr.f32.mxu0 %v2737_v54 }
 0x197   : > { %4062 = vmatmul.mubr.f32.gmra.mrb[30].mxu1 %v1513_v58 }
 0x198   : > { %4382 = vmatmul.mubr.f32.gmra.mrb[30].mxu0 %v2738_v63 }
 0x20e   : > { %v3938_v61 = vpop.f32.mrb[0].mxu1 }
 0x20f   : > { %v1291_v39 = vpop.f32.mrb[1].mxu1 }
 0x212   : > { %v3941_v13 = vpop.f32.mrb[2].mxu1 }
 0x213   : > { %v1301_v34 = vpop.f32.mrb[3].mxu1 }
 0x216   : > { %v3944_v27 = vpop.f32.mrb[4].mxu1 }
 0x217   : > { %v1311_v21 = vpop.f32.mrb[5].mxu1 }
 0x21a   : > { %v3947_v6 = vpop.f32.mrb[6].mxu1 }
 0x21b   : > { %v1321_v18 = vpop.f32.mrb[7].mxu1 }
 0x21e   : > { %v3950_v23 = vpop.f32.mrb[8].mxu1 }
 0x21f   : > { %v1331_v3 = vpop.f32.mrb[9].mxu1 }
 0x222   : > { %v3953_v25 = vpop.f32.mrb[10].mxu1 }
 0x223   : > { %v1341_v14 = vpop.f32.mrb[11].mxu1 }
 0x226   : > { %v5930_v28 = vpop.f32.mrb[12].mxu1 }
 0x227   : > { %v5932_v50 = vpop.f32.mrb[13].mxu1 }
 0x22a   : > { %v5934_v44 = vpop.f32.mrb[14].mxu1 }
 0x22b   : > { %v5936_v37 = vpop.f32.mrb[15].mxu1 }
 0x22f   : > { %v4338_v57 = vpop.f32.mrb[0].mxu0 }
 0x230   : > { %v4688_v2 = vadd.f32 %v4338_v57, %v3938_v61  ;;  %v2822_v56 = vpop.f32.mrb[1].mxu0 }
 0x231   : > { %v4689_v47 = vadd.f32 %v2822_v56, %v1291_v39 }
 0x232   : > { %v3021_v31 = vadd.f32 %v4688_v2, %v5941_v40 }
 0x233   : > { %v3020_v26 = vadd.f32 %v4689_v47, %v5941_v40  ;;  %v4341_v51 = vpop.f32.mrb[2].mxu0 }
 0x234   : > { %v3053_v62 = vmax.f32 %v3021_v31, 0.0  ;;  %v4690_v52 = vadd.f32 %v4341_v51, %v3941_v13  ;;  %v2832_v1 = vpop.f32.mrb[3].mxu0 }
 0x235   : > { %v3052_v4 = vmax.f32 %v3020_v26, 0.0  ;;  %v4691_v53 = vadd.f32 %v2832_v1, %v1301_v34 }
 0x236   : > { %3085 = vst [vmem:[%s5947_s8 + $0x8] sm:$0xff] %v3053_v62  ;;  %v3023_v15 = vadd.f32 %v4690_v52, %v5941_v40 }
 0x237   : > { %3084 = vst [vmem:[%s5947_s8] sm:$0xff] %v3052_v4  ;;  %v3022_v19 = vadd.f32 %v4691_v53, %v5941_v40  ;;  %v4344_v22 = vpop.f32.mrb[4].mxu0 }
 0x238   : > { %v3055_v29 = vmax.f32 %v3023_v15, 0.0  ;;  %v4692_v35 = vadd.f32 %v4344_v22, %v3944_v27  ;;  %v2842_v48 = vpop.f32.mrb[5].mxu0 }
 0x239   : > { %v3054_v24 = vmax.f32 %v3022_v19, 0.0  ;;  %v4693_v16 = vadd.f32 %v2842_v48, %v1311_v21 }
 0x23a   : > { %3087 = vst [vmem:[%s5947_s8 + $0x18] sm:$0xff] %v3055_v29  ;;  %v3025_v12 = vadd.f32 %v4692_v35, %v5941_v40 }
 0x23b   : > { %3086 = vst [vmem:[%s5947_s8 + $0x10] sm:$0xff] %v3054_v24  ;;  %v3024_v41 = vadd.f32 %v4693_v16, %v5941_v40  ;;  %v4347_v32 = vpop.f32.mrb[6].mxu0 }
 0x23c   : > { %v3057_v30 = vmax.f32 %v3025_v12, 0.0  ;;  %v4694_v59 = vadd.f32 %v4347_v32, %v3947_v6  ;;  %v2852_v46 = vpop.f32.mrb[7].mxu0 }
 0x23d   : > { %v3056_v5 = vmax.f32 %v3024_v41, 0.0  ;;  %v4695_v9 = vadd.f32 %v2852_v46, %v1321_v18 }
 0x23e   : > { %3089 = vst [vmem:[%s5947_s8 + $0x28] sm:$0xff] %v3057_v30  ;;  %v3027_v60 = vadd.f32 %v4694_v59, %v5941_v40 }
 0x23f   : > { %3088 = vst [vmem:[%s5947_s8 + $0x20] sm:$0xff] %v3056_v5  ;;  %v3026_v45 = vadd.f32 %v4695_v9, %v5941_v40  ;;  %v4350_v10 = vpop.f32.mrb[8].mxu0 }
 0x240   : > { %v3059_v33 = vmax.f32 %v3027_v60, 0.0  ;;  %v4696_v11 = vadd.f32 %v4350_v10, %v3950_v23  ;;  %v2862_v7 = vpop.f32.mrb[9].mxu0 }
 0x241   : > { %v3058_v0 = vmax.f32 %v3026_v45, 0.0  ;;  %v4697_v38 = vadd.f32 %v2862_v7, %v1331_v3 }
 0x242   : > { %3091 = vst [vmem:[%s5947_s8 + $0x38] sm:$0xff] %v3059_v33  ;;  %v3029_v42 = vadd.f32 %v4696_v11, %v5941_v40 }
 0x243   : > { %3090 = vst [vmem:[%s5947_s8 + $0x30] sm:$0xff] %v3058_v0  ;;  %v3028_v17 = vadd.f32 %v4697_v38, %v5941_v40  ;;  %v4353_v20 = vpop.f32.mrb[10].mxu0 }
 0x244   : > { %v3061_v43 = vmax.f32 %v3029_v42, 0.0  ;;  %v4698_v55 = vadd.f32 %v4353_v20, %v3953_v25  ;;  %v2872_v36 = vpop.f32.mrb[11].mxu0 }
 0x245   : > { %v3060_v8 = vmax.f32 %v3028_v17, 0.0  ;;  %v4699_v49 = vadd.f32 %v2872_v36, %v1341_v14 }
 0x246   : > { %3093 = vst [vmem:[%s5947_s8 + $0x48] sm:$0xff] %v3061_v43  ;;  %v3031_v54 = vadd.f32 %v4698_v55, %v5941_v40 }
 0x247   : > { %3092 = vst [vmem:[%s5947_s8 + $0x40] sm:$0xff] %v3060_v8  ;;  %v3030_v58 = vadd.f32 %v4699_v49, %v5941_v40  ;;  %v4356_v63 = vpop.f32.mrb[12].mxu0 }
 0x248   : > { %v3063_v61 = vmax.f32 %v3031_v54, 0.0  ;;  %v4700_v39 = vadd.f32 %v4356_v63, %v5930_v28  ;;  %v2882_v13 = vpop.f32.mrb[13].mxu0 }
 0x249   : > { %v3062_v34 = vmax.f32 %v3030_v58, 0.0  ;;  %v4701_v27 = vadd.f32 %v2882_v13, %v5932_v50 }
 0x24a   : > { %3095 = vst [vmem:[%s5947_s8 + $0x58] sm:$0xff] %v3063_v61  ;;  %v3033_v21 = vadd.f32 %v4700_v39, %v5941_v40 }
 0x24b   : > { %3094 = vst [vmem:[%s5947_s8 + $0x50] sm:$0xff] %v3062_v34  ;;  %v3032_v6 = vadd.f32 %v4701_v27, %v5941_v40  ;;  %v4359_v18 = vpop.f32.mrb[14].mxu0 }
 0x24c   : > { %v3065_v23 = vmax.f32 %v3033_v21, 0.0  ;;  %v4702_v3 = vadd.f32 %v4359_v18, %v5934_v44  ;;  %v2892_v25 = vpop.f32.mrb[15].mxu0 }
 0x24d   : > { %v3064_v14 = vmax.f32 %v3032_v6, 0.0  ;;  %v4703_v28 = vadd.f32 %v2892_v25, %v5936_v37 }
 0x24e   : > { %3097 = vst [vmem:[%s5947_s8 + $0x68] sm:$0xff] %v3065_v23  ;;  %v3035_v57 = vadd.f32 %v4702_v3, %v5941_v40  ;;  %v4042_v50 = vpop.f32.mrb[16].mxu1 }
 0x24f   : > { %3096 = vst [vmem:[%s5947_s8 + $0x60] sm:$0xff] %v3064_v14  ;;  %v3034_v2 = vadd.f32 %v4703_v28, %v5941_v40  ;;  %v4362_v56 = vpop.f32.mrb[16].mxu0  ;;  %v1677_v47 = vpop.f32.mrb[17].mxu1 }
 0x250   : > { %v3067_v31 = vmax.f32 %v3035_v57, 0.0  ;;  %v4704_v26 = vadd.f32 %v4362_v56, %v4042_v50  ;;  %v2902_v51 = vpop.f32.mrb[17].mxu0 }
 0x251   : > { %v3066_v44 = vmax.f32 %v3034_v2, 0.0  ;;  %v4705_v62 = vadd.f32 %v2902_v51, %v1677_v47 }
 0x252   : > { %3099 = vst [vmem:[%s5947_s8 + $0x78] sm:$0xff] %v3067_v31  ;;  %v3037_v37 = vadd.f32 %v4704_v26, %v5941_v40  ;;  %v4045_v52 = vpop.f32.mrb[18].mxu1 }
 0x253   : > { %3098 = vst [vmem:[%s5947_s8 + $0x70] sm:$0xff] %v3066_v44  ;;  %v3036_v1 = vadd.f32 %v4705_v62, %v5941_v40  ;;  %v4365_v4 = vpop.f32.mrb[18].mxu0  ;;  %v1687_v53 = vpop.f32.mrb[19].mxu1 }
 0x254   : > { %v3069_v15 = vmax.f32 %v3037_v37, 0.0  ;;  %v4706_v19 = vadd.f32 %v4365_v4, %v4045_v52  ;;  %v2912_v22 = vpop.f32.mrb[19].mxu0 }
 0x255   : > { %v3068_v29 = vmax.f32 %v3036_v1, 0.0  ;;  %v4707_v35 = vadd.f32 %v2912_v22, %v1687_v53 }
 0x256   : > { %3101 = vst [vmem:[%s5947_s8 + $0x88] sm:$0xff] %v3069_v15  ;;  %v3039_v48 = vadd.f32 %v4706_v19, %v5941_v40  ;;  %v4048_v24 = vpop.f32.mrb[20].mxu1 }
 0x257   : > { %3100 = vst [vmem:[%s5947_s8 + $0x80] sm:$0xff] %v3068_v29  ;;  %v3038_v16 = vadd.f32 %v4707_v35, %v5941_v40  ;;  %v4368_v12 = vpop.f32.mrb[20].mxu0  ;;  %v1697_v41 = vpop.f32.mrb[21].mxu1 }
 0x258   : > { %v3071_v32 = vmax.f32 %v3039_v48, 0.0  ;;  %v4708_v30 = vadd.f32 %v4368_v12, %v4048_v24  ;;  %v2922_v59 = vpop.f32.mrb[21].mxu0 }
 0x259   : > { %v3070_v46 = vmax.f32 %v3038_v16, 0.0  ;;  %v4709_v5 = vadd.f32 %v2922_v59, %v1697_v41 }
 0x25a   : > { %3103 = vst [vmem:[%s5947_s8 + $0x98] sm:$0xff] %v3071_v32  ;;  %v3041_v9 = vadd.f32 %v4708_v30, %v5941_v40  ;;  %v4051_v60 = vpop.f32.mrb[22].mxu1 }
 0x25b   : > { %3102 = vst [vmem:[%s5947_s8 + $0x90] sm:$0xff] %v3070_v46  ;;  %v3040_v45 = vadd.f32 %v4709_v5, %v5941_v40  ;;  %v4371_v10 = vpop.f32.mrb[22].mxu0  ;;  %v1707_v33 = vpop.f32.mrb[23].mxu1 }
 0x25c   : > { %v3073_v11 = vmax.f32 %v3041_v9, 0.0  ;;  %v4710_v7 = vadd.f32 %v4371_v10, %v4051_v60  ;;  %v2932_v0 = vpop.f32.mrb[23].mxu0 }
 0x25d   : > { %v3072_v38 = vmax.f32 %v3040_v45, 0.0  ;;  %v4711_v42 = vadd.f32 %v2932_v0, %v1707_v33 }
 0x25e   : > { %3105 = vst [vmem:[%s5947_s8 + $0xa8] sm:$0xff] %v3073_v11  ;;  %v3043_v17 = vadd.f32 %v4710_v7, %v5941_v40  ;;  %v4054_v20 = vpop.f32.mrb[24].mxu1 }
 0x25f   : > { %3104 = vst [vmem:[%s5947_s8 + $0xa0] sm:$0xff] %v3072_v38  ;;  %v3042_v43 = vadd.f32 %v4711_v42, %v5941_v40  ;;  %v4374_v55 = vpop.f32.mrb[24].mxu0  ;;  %v1717_v36 = vpop.f32.mrb[25].mxu1 }
 0x260   : > { %v3075_v8 = vmax.f32 %v3043_v17, 0.0  ;;  %v4712_v49 = vadd.f32 %v4374_v55, %v4054_v20  ;;  %v2942_v54 = vpop.f32.mrb[25].mxu0 }
 0x261   : > { %v3074_v58 = vmax.f32 %v3042_v43, 0.0  ;;  %v4713_v63 = vadd.f32 %v2942_v54, %v1717_v36 }
 0x262   : > { %3107 = vst [vmem:[%s5947_s8 + $0xb8] sm:$0xff] %v3075_v8  ;;  %v3045_v61 = vadd.f32 %v4712_v49, %v5941_v40  ;;  %v4057_v39 = vpop.f32.mrb[26].mxu1 }
 0x263   : > { %3106 = vst [vmem:[%s5947_s8 + $0xb0] sm:$0xff] %v3074_v58  ;;  %v3044_v13 = vadd.f32 %v4713_v63, %v5941_v40  ;;  %v4377_v34 = vpop.f32.mrb[26].mxu0  ;;  %v1727_v27 = vpop.f32.mrb[27].mxu1 }
 0x264   : > { %v3077_v21 = vmax.f32 %v3045_v61, 0.0  ;;  %v4714_v6 = vadd.f32 %v4377_v34, %v4057_v39  ;;  %v2952_v18 = vpop.f32.mrb[27].mxu0 }
 0x265   : > { %v3076_v23 = vmax.f32 %v3044_v13, 0.0  ;;  %v4715_v3 = vadd.f32 %v2952_v18, %v1727_v27 }
 0x266   : > { %3109 = vst [vmem:[%s5947_s8 + $0xc8] sm:$0xff] %v3077_v21  ;;  %v3047_v25 = vadd.f32 %v4714_v6, %v5941_v40  ;;  %v4060_v14 = vpop.f32.mrb[28].mxu1 }
 0x267   : > { %3108 = vst [vmem:[%s5947_s8 + $0xc0] sm:$0xff] %v3076_v23  ;;  %v3046_v28 = vadd.f32 %v4715_v3, %v5941_v40  ;;  %v4380_v57 = vpop.f32.mrb[28].mxu0  ;;  %v1737_v50 = vpop.f32.mrb[29].mxu1 }
 0x268   : > { %v3079_v2 = vmax.f32 %v3047_v25, 0.0  ;;  %v4716_v56 = vadd.f32 %v4380_v57, %v4060_v14  ;;  %v2962_v47 = vpop.f32.mrb[29].mxu0 }
 0x269   : > { %v3078_v31 = vmax.f32 %v3046_v28, 0.0  ;;  %v4717_v26 = vadd.f32 %v2962_v47, %v1737_v50 }
 0x26a   : > { %3111 = vst [vmem:[%s5947_s8 + $0xd8] sm:$0xff] %v3079_v2  ;;  %v3049_v51 = vadd.f32 %v4716_v56, %v5941_v40  ;;  %v4063_v44 = vpop.f32.mrb[30].mxu1 }
 0x26b   : > { %3110 = vst [vmem:[%s5947_s8 + $0xd0] sm:$0xff] %v3078_v31  ;;  %v3048_v62 = vadd.f32 %v4717_v26, %v5941_v40  ;;  %v4383_v37 = vpop.f32.mrb[30].mxu0  ;;  %v1747_v52 = vpop.f32.mrb[31].mxu1 }
 0x26c   : > { %v3081_v1 = vmax.f32 %v3049_v51, 0.0  ;;  %v4718_v4 = vadd.f32 %v4383_v37, %v4063_v44  ;;  %v2972_v53 = vpop.f32.mrb[31].mxu0 }
 0x26d   : > { %v3080_v15 = vmax.f32 %v3048_v62, 0.0  ;;  %v4719_v19 = vadd.f32 %v2972_v53, %v1747_v52 }
 0x26e   : > { %3113 = vst [vmem:[%s5947_s8 + $0xe8] sm:$0xff] %v3081_v1  ;;  %v3051_v22 = vadd.f32 %v4718_v4, %v5941_v40 }
 0x26f   : > { %3112 = vst [vmem:[%s5947_s8 + $0xe0] sm:$0xff] %v3080_v15  ;;  %v3050_v29 = vadd.f32 %v4719_v19, %v5941_v40 }
 0x270   : > { %v3083_v35 = vmax.f32 %v3051_v22, 0.0 }
 0x271   : > { %v3082_v48 = vmax.f32 %v3050_v29, 0.0 }
 0x272   : > { %3115 = vst [vmem:[%s5947_s8 + $0xf8] sm:$0xff] %v3083_v35 }
 0x273   : > { %3114 = vst [vmem:[%s5947_s8 + $0xf0] sm:$0xff] %v3082_v48 }
 0x274   : > { %5086 = shalt.err (!%p5083_p7)
}
 0x275   : > { %s5087_s30 = scalar_lea.hbm %s6018_s11, 4096  ;;  %s5091_s10 = scalar_lea.hbm %s6069_s3, 8192 }
 0x276   : > { %p5088_p9 = scmp.ne.s32.totalorder %s6018_s11, %s5087_s30  ;;  %p5092_p5 = scmp.lt.u32.totalorder %s6018_s11, %s6069_s3 }
 0x277   : > { %p5093_p11 = scmp.lt.u32.totalorder %s5091_s10, %s5087_s30  ;;  %p5095_p4 = scmp.lt.u32.totalorder %s5087_s30, %s6018_s11 }
 0x278   : > { %p5089_p1 = pnand %p5088_p9, %p5267_p12 }
 0x279   : > { %p5094_p2 = por %p5093_p11, %p5092_p5 }
 0x27a   : > { %p5090_p0 = pneg %p5089_p1 }
 0x27b   : > { %p5096_p6 = por %p5095_p4, %p5094_p2 }
 0x27d   : > { %p5097_p8 = pnand %p5096_p6, %p5090_p0 }
 0x27f   : > { %5100 = shalt.err (!%p5097_p8)
}
 0x280   : > { %s5151_s20 = smov 128   ;;  %s5152_s8 = smov 8  }
 0x281   : > { %4950 = dma.vmem_to_hbm [thread:$0]  (%p5267_p12), %s6020_s4, 4096, %s6018_s11, %s3117_s16, %s5151_s20, %s5151_s20, %s5152_s8  }
 0x282 PF: > { %s3145_s9 = sand.u32 1, %s5131_s12   ;;  %p6143_p10 = scmp.ne.s32.totalorder %s6097_s19, 0 }
 0x283   : > { %p6144_p13 = scmp.ge.s32.totalorder %s5143_s15, 2  ;;  %s3146_s25 = scalar_lea.sflag [#allocation5], %s3145_s9 }
 0x285   : > { %p4961_p3 = pnand %p6144_p13, %p6143_p10 }
 0x287   : > { %5126 = dma.done.wait (!%p4961_p3), %s3146_s25, 4096  }
 0x288   : > { %5128 = vsyncadd (!%p4961_p3), %s3146_s25, 4294963200  ;;  %p17_p7 = scmp.ge.s32.totalorder %s5229_s24, 4   ;;  %s6145_s12 = smov %s5135_s13 }
 0x289   : > { %s6146_s13 = smov %s5139_s14  ;;  %s6147_s14 = smov %s5263_s17 }
 0x28a   : > { %s6148_s15 = smov %s5229_s24  ;;  %19 = sbr.rel (!%p17_p7) target bundleno = 6 (0x6), region = 91 }
 0x291   :  { %3151 = vsyncpa [#allocation4], 1 }
 0x292   :  { %3153 = vsyncpa [#allocation4 + $0x1], 1 }
 0x293   :  { %3154 = vsyncpa [#allocation7], 1 }
 0x294   :  { %3155 = vsyncpa [#allocation5], 1 }
 0x295   :  { %3157 = vsyncpa [#allocation5 + $0x1], 1 }

</bundles_post_ra>
